<compile_context>
chip_gen: v7x
topology: tpu7x:2x2x1
jax: 0.10.0
libtpu: 0.0.40
codegen_flags: <defaults>
</compile_context>

<pallas_src>
import functools

import numpy as np
import jax
import jax.numpy as jnp
from jax import lax
from jax.experimental import pallas as pl
from jax.experimental.pallas import tpu as pltpu


# ----------------------------------------------------------------------------
# Fused kernel: LSTM stack -> MHA(last query) -> residual + LayerNorm -> fc.
# ----------------------------------------------------------------------------
def fused_forward_kernel(*refs, num_layers):
    x_ref = refs[0]                                    # (T, B, Din) f32, time-major
    layer_refs = refs[1:1 + 3 * num_layers]            # per layer: wih(bf16), whh(bf16), b(f32)
    (wqkv_ref, bqkv_ref, wo_ref, bo_ref, gamma_ref, beta_ref,
     wfc_ref, bfc_ref, headm_ref, headx_ref) = refs[1 + 3 * num_layers:-1]
    out_ref = refs[-1]                                 # (B, 128) f32, lane-dense

    T, B, din0 = x_ref.shape
    H = layer_refs[1].shape[0]                         # whh_t: (H, 4H)

    # g-gate lane mask (lanes [2H, 3H)), hoisted out of the unrolled loops.
    lane = lax.broadcasted_iota(jnp.int32, (B, 4 * H), 1)
    g_mask = jnp.logical_and(lane >= 2 * H, lane < 3 * H)

    # ---------------- LSTM stack (time-major, rows = t*B + b) ----------------
    layer_in = x_ref[...].reshape(T * B, din0)
    for l in range(num_layers):
        wih = layer_refs[3 * l][...]                   # (Din_l, 4H) bf16
        whh = layer_refs[3 * l + 1][...]               # (H, 4H)    bf16
        b = layer_refs[3 * l + 2][...]                 # (1, 4H)    f32

        # Hoist the input projection off the serial path: one batched matmul.
        inp_proj = (jnp.dot(layer_in.astype(jnp.bfloat16), wih,
                            preferred_element_type=jnp.float32) + b)

        h = jnp.zeros((B, H), jnp.float32)
        c = jnp.zeros((B, H), jnp.float32)
        hs = []
        # Fully unrolled recurrence (T static & small): one (B,H)@(H,4H) matmul
        # per serial step.
        # TODO(synk): if the Mosaic dump shows W_hh re-pushed each step, stage
        # it once per layer via pltpu.matmul_push_rhs/matmul_acc_lhs/matmul_pop.
        for t in range(T):
            gates = inp_proj[t * B:(t + 1) * B, :] + jnp.dot(
                h.astype(jnp.bfloat16), whh,
                preferred_element_type=jnp.float32)                 # (B, 4H)
            # Single-tanh gate trick: sigmoid(x) = 0.5*tanh(0.5*x) + 0.5.
            pre = jnp.where(g_mask, gates, 0.5 * gates)
            th = jnp.tanh(pre)                                      # one EUP pass
            act = jnp.where(g_mask, th, 0.5 * th + 0.5)             # i,f,g,o
            i_g = act[:, 0 * H:1 * H]
            f_g = act[:, 1 * H:2 * H]
            g_g = act[:, 2 * H:3 * H]
            o_g = act[:, 3 * H:4 * H]
            c = f_g * c + i_g * g_g
            h = o_g * jnp.tanh(c)
            hs.append(h)                               # stays in vregs
        layer_in = jnp.concatenate(hs, axis=0)         # (T*B, H) f32, one shot
        # TODO(synk): inter-layer LSTM dropout (p=0.288) is train-only; eval path.

    # -------- Multi-head self-attention (last query only) + LN + fc ---------
    seq = layer_in                                     # (T*B, H), row = t*B + b
    qkv = (jnp.dot(seq.astype(jnp.bfloat16), wqkv_ref[...],
                   preferred_element_type=jnp.float32)
           + bqkv_ref[...])                            # (T*B, 3H) fused Q|K|V
    q_last = qkv[(T - 1) * B:T * B, 0:H]               # (B, H) query @ t = T-1
    k = qkv[:, H:2 * H]                                # (T*B, H)
    v = qkv[:, 2 * H:3 * H]                            # (T*B, H)

    # scores[r, hh] = scale * <q_last[r % B, head hh], k[r, head hh]>
    q_rows = jnp.tile(q_last, (T, 1))                  # row r -> q_last[r % B]
    scores = jnp.dot((q_rows * k).astype(jnp.bfloat16), headm_ref[...],
                     preferred_element_type=jnp.float32)            # (T*B, nh)

    # Per-(batch, head) softmax over time (static time-axis reductions; rows
    # are time-major so the t-th block is scores[t*B:(t+1)*B]).
    m = scores[0:B, :]
    for t in range(1, T):
        m = jnp.maximum(m, scores[t * B:(t + 1) * B, :])            # (B, nh)
    e = jnp.exp(scores - jnp.tile(m, (T, 1)))                       # (T*B, nh)
    denom = e[0:B, :]
    for t in range(1, T):
        denom = denom + e[t * B:(t + 1) * B, :]                     # (B, nh)
    p = e * jnp.tile(pl.reciprocal(denom, approx=True), (T, 1))     # (T*B, nh)

    # context: ctx[b, d] = sum_t p[(b, head(d), t)] * v[t*B + b, d]
    p_full = jnp.dot(p.astype(jnp.bfloat16), headx_ref[...],
                     preferred_element_type=jnp.float32)            # (T*B, H)
    pv = p_full * v
    ctx = pv[0:B, :]
    for t in range(1, T):
        ctx = ctx + pv[t * B:(t + 1) * B, :]                        # (B, H)

    attn_out = (jnp.dot(ctx.astype(jnp.bfloat16), wo_ref[...],
                        preferred_element_type=jnp.float32)
                + bo_ref[...])                                      # out_proj
    resid = seq[(T - 1) * B:T * B, :] + attn_out       # residual @ last step
    mu = jnp.mean(resid, axis=-1, keepdims=True)
    var = jnp.mean((resid - mu) ** 2, axis=-1, keepdims=True)
    y = (resid - mu) * lax.rsqrt(var + 1e-5)
    y = y * gamma_ref[...] + beta_ref[...]                          # LayerNorm
    out_ref[...] = (jnp.dot(y.astype(jnp.bfloat16), wfc_ref[...],
                            preferred_element_type=jnp.float32)
                    + bfc_ref[...])                    # (B, 128) lane-dense store


# ----------------------------------------------------------------------------
# Wrapper: single pallas_call, whole arrays resident in VMEM (tiny model).
# ----------------------------------------------------------------------------
def lstm_model_forward(x, params, num_heads=4):
    B, T, _ = x.shape
    H = params["lstm"][0]["whh_t"].shape[0]
    num_layers = len(params["lstm"])
    O = params["wfc_t"].shape[1]
    hd = H // num_heads
    o_pad = max(128, ((O + 127) // 128) * 128)         # lane-dense output slab

    x_tm = jnp.transpose(x, (1, 0, 2)).astype(jnp.float32)   # (T, B, Din)

    # Constant indicator matrices (host-side, bf16); turn per-head segmented
    # reductions/expansions into plain MXU matmuls inside the kernel.
    head_ind = (np.arange(H)[:, None] // hd) == np.arange(num_heads)[None, :]
    head_mat = jnp.asarray(head_ind / np.sqrt(hd), jnp.bfloat16)    # (H, nh) scaled
    head_expand = jnp.asarray(head_ind.T, jnp.bfloat16)             # (nh, H)

    # Zero-pad the fc projection to 128 output lanes (unmasked final store).
    wfc_pad = jnp.zeros((H, o_pad), jnp.bfloat16)
    wfc_pad = wfc_pad.at[:, :O].set(params["wfc_t"].astype(jnp.bfloat16))
    bfc_pad = jnp.zeros((1, o_pad), jnp.float32).at[:, :O].set(params["bfc"])

    inputs = [x_tm]
    for layer in params["lstm"]:
        inputs += [layer["wih_t"].astype(jnp.bfloat16),
                   layer["whh_t"].astype(jnp.bfloat16),
                   layer["b"]]
    inputs += [params["wqkv_t"].astype(jnp.bfloat16), params["bqkv"],
               params["wo_t"].astype(jnp.bfloat16), params["bo"],
               params["gamma"], params["beta"],
               wfc_pad, bfc_pad, head_mat, head_expand]

    kernel = functools.partial(fused_forward_kernel, num_layers=num_layers)
    out_pad = pl.pallas_call(
        kernel,
        out_shape=jax.ShapeDtypeStruct((B, o_pad), jnp.float32),
        in_specs=[pl.BlockSpec(memory_space=pltpu.MemorySpace.VMEM)] * len(inputs),
        out_specs=pl.BlockSpec(memory_space=pltpu.MemorySpace.VMEM),
    )(*inputs)
    # TODO(synk): for production batches on v7x, add a "parallel" batch grid
    # axis so the second TensorCore is used; pointless at B=2.
    return out_pad[:, :O]


# ----------------------------------------------------------------------------
# Deterministic parameter init (PyTorch layouts, pre-transposed for x @ W).
# ----------------------------------------------------------------------------
def init_params(key, input_size, hidden_size, num_layers, output_size):
    H = hidden_size
    keys = iter(jax.random.split(key, num_layers * 4 + 8))

    def rnd(shape, scale=0.1):
        return (scale * jax.random.normal(next(keys), shape)).astype(jnp.float32)

    lstm = []
    for l in range(num_layers):
        din = input_size if l == 0 else H
        w_ih = rnd((4 * H, din))
        w_hh = rnd((4 * H, H))
        b_ih = rnd((4 * H,))
        b_hh = rnd((4 * H,))
        lstm.append(dict(wih_t=jnp.transpose(w_ih),
                         whh_t=jnp.transpose(w_hh),
                         b=(b_ih + b_hh).reshape(1, 4 * H)))

    in_proj_w = rnd((3 * H, H))        # [Wq; Wk; Wv] stacked, PyTorch layout
    in_proj_b = rnd((3 * H,))
    out_proj_w = rnd((H, H))
    out_proj_b = rnd((H,))
    fc_w = rnd((output_size, H))
    fc_b = rnd((output_size,))

    return dict(
        lstm=lstm,
        wqkv_t=jnp.transpose(in_proj_w),               # (H, 3H): cols = [q|k|v]
        bqkv=in_proj_b.reshape(1, 3 * H),
        wo_t=jnp.transpose(out_proj_w), bo=out_proj_b.reshape(1, H),
        gamma=jnp.ones((1, H), jnp.float32), beta=jnp.zeros((1, H), jnp.float32),
        wfc_t=jnp.transpose(fc_w), bfc=fc_b.reshape(1, output_size))


# ----------------------------------------------------------------------------
# Pure-JAX reference (same math, f32, no Pallas) for numerical sanity checking.
# ----------------------------------------------------------------------------
def reference_forward(x, params, num_heads=4):
    B, T, _ = x.shape
    h_seq = x
    for layer in params["lstm"]:
        H = layer["whh_t"].shape[0]
        outs = []
        h = jnp.zeros((B, H), jnp.float32)
        c = jnp.zeros((B, H), jnp.float32)
        for t in range(T):
            gates = h_seq[:, t, :] @ layer["wih_t"] + h @ layer["whh_t"] + layer["b"]
            i = jax.nn.sigmoid(gates[:, :H])
            f = jax.nn.sigmoid(gates[:, H:2 * H])
            g = jnp.tanh(gates[:, 2 * H:3 * H])
            o = jax.nn.sigmoid(gates[:, 3 * H:])
            c = f * c + i * g
            h = o * jnp.tanh(c)
            outs.append(h)
        h_seq = jnp.stack(outs, axis=1)
    H = h_seq.shape[-1]
    hd = H // num_heads
    wqkv, bqkv = params["wqkv_t"], params["bqkv"]
    q = h_seq @ wqkv[:, :H] + bqkv[:, :H]
    k = h_seq @ wqkv[:, H:2 * H] + bqkv[:, H:2 * H]
    v = h_seq @ wqkv[:, 2 * H:] + bqkv[:, 2 * H:]
    qh = q.reshape(B, T, num_heads, hd)
    kh = k.reshape(B, T, num_heads, hd)
    vh = v.reshape(B, T, num_heads, hd)
    scores = jnp.einsum("bqhd,bkhd->bhqk", qh, kh) / np.sqrt(hd)
    p = jax.nn.softmax(scores, axis=-1)
    ctx = jnp.einsum("bhqk,bkhd->bqhd", p, vh).reshape(B, T, H)
    attn_out = ctx @ params["wo_t"] + params["bo"]
    resid = h_seq + attn_out
    mu = resid.mean(-1, keepdims=True)
    var = ((resid - mu) ** 2).mean(-1, keepdims=True)
    y = (resid - mu) / jnp.sqrt(var + 1e-5) * params["gamma"] + params["beta"]
    return y[:, -1, :] @ params["wfc_t"] + params["bfc"]


if __name__ == "__main__":
    B, T = 2, 8
    input_size, hidden_size, num_layers, output_size = 4, 32, 2, 4

    key = jax.random.PRNGKey(0)
    pkey, xkey = jax.random.split(key)
    params = init_params(pkey, input_size, hidden_size, num_layers, output_size)
    x = jax.random.normal(xkey, (B, T, input_size), dtype=jnp.float32)

    out = jax.jit(lambda xx: lstm_model_forward(xx, params))(x)
    out = jax.block_until_ready(out)

    ref = reference_forward(x, params)
    np.testing.assert_allclose(np.asarray(out), np.asarray(ref), rtol=2e-2, atol=2e-2)
    assert out.shape == (B, output_size)
    print("KERNEL_OK")
</pallas_src>

<mosaic_0001>
module attributes {stable_mosaic.version = 11 : i64} {
  func.func @fused_forward_kernel(%arg0: memref<8x2x4xf32, #tpu.memory_space<vmem>>, %arg1: memref<4x128xbf16, #tpu.memory_space<vmem>>, %arg2: memref<32x128xbf16, #tpu.memory_space<vmem>>, %arg3: memref<1x128xf32, #tpu.memory_space<vmem>>, %arg4: memref<32x128xbf16, #tpu.memory_space<vmem>>, %arg5: memref<32x128xbf16, #tpu.memory_space<vmem>>, %arg6: memref<1x128xf32, #tpu.memory_space<vmem>>, %arg7: memref<32x96xbf16, #tpu.memory_space<vmem>>, %arg8: memref<1x96xf32, #tpu.memory_space<vmem>>, %arg9: memref<32x32xbf16, #tpu.memory_space<vmem>>, %arg10: memref<1x32xf32, #tpu.memory_space<vmem>>, %arg11: memref<1x32xf32, #tpu.memory_space<vmem>>, %arg12: memref<1x32xf32, #tpu.memory_space<vmem>>, %arg13: memref<32x128xbf16, #tpu.memory_space<vmem>>, %arg14: memref<1x128xf32, #tpu.memory_space<vmem>>, %arg15: memref<32x4xbf16, #tpu.memory_space<vmem>>, %arg16: memref<4x32xbf16, #tpu.memory_space<vmem>>, %arg17: memref<2x128xf32, #tpu.memory_space<vmem>>) attributes {dimension_semantics = [], scalar_prefetch = 0 : i64, scratch_operands = 0 : i64, tpu.core_type = #tpu.core_type<tc>} {
    %0 = tpu.iota {dimensions = array<i32: 1>} : vector<2x128xi32>
    %c64_i32 = arith.constant 64 : i32
    %1 = vector.broadcast %c64_i32 : i32 to vector<2x128xi32>
    %2 = arith.cmpi sge, %0, %1 : vector<2x128xi32>
    %c96_i32 = arith.constant 96 : i32
    %3 = vector.broadcast %c96_i32 : i32 to vector<2x128xi32>
    %4 = arith.cmpi slt, %0, %3 : vector<2x128xi32>
    %5 = arith.andi %2, %4 : vector<2x128xi1>
    %c0 = arith.constant 0 : index
    %c0_0 = arith.constant 0 : index
    %c0_1 = arith.constant 0 : index
    %6 = vector.load %arg0[%c0, %c0_0, %c0_1] : memref<8x2x4xf32, #tpu.memory_space<vmem>>, vector<8x2x4xf32>
    %7 = vector.shape_cast %6 : vector<8x2x4xf32> to vector<16x4xf32>
    %c0_2 = arith.constant 0 : index
    %c0_3 = arith.constant 0 : index
    %8 = vector.load %arg1[%c0_2, %c0_3] : memref<4x128xbf16, #tpu.memory_space<vmem>>, vector<4x128xbf16>
    %c0_4 = arith.constant 0 : index
    %c0_5 = arith.constant 0 : index
    %9 = vector.load %arg2[%c0_4, %c0_5] : memref<32x128xbf16, #tpu.memory_space<vmem>>, vector<32x128xbf16>
    %c0_6 = arith.constant 0 : index
    %c0_7 = arith.constant 0 : index
    %10 = vector.load %arg3[%c0_6, %c0_7] : memref<1x128xf32, #tpu.memory_space<vmem>>, vector<1x128xf32>
    %11 = arith.truncf %7 : vector<16x4xf32> to vector<16x4xbf16>
    %cst = arith.constant dense<0.000000e+00> : vector<16x128xf32>
    %12 = tpu.matmul %11, %8, %cst {dimension_numbers = #tpu.dot_dimension_numbers<[1], [0], [0], [1], [0, 0, 1, 1], [], []>} : vector<16x4xbf16>, vector<4x128xbf16>, vector<16x128xf32> -> vector<16x128xf32>
    %13 = vector.broadcast %10 : vector<1x128xf32> to vector<16x128xf32>
    %14 = arith.addf %12, %13 : vector<16x128xf32>
    %cst_8 = arith.constant 0.000000e+00 : f32
    %15 = vector.broadcast %cst_8 : f32 to vector<2x32xf32>
    %cst_9 = arith.constant 0.000000e+00 : f32
    %16 = vector.broadcast %cst_9 : f32 to vector<2x32xf32>
    %17 = vector.extract_strided_slice %14 {offsets = [0, 0], sizes = [2, 128], strides = [1, 1]} : vector<16x128xf32> to vector<2x128xf32>
    %18 = arith.truncf %15 : vector<2x32xf32> to vector<2x32xbf16>
    %cst_10 = arith.constant dense<0.000000e+00> : vector<2x128xf32>
    %19 = tpu.matmul %18, %9, %cst_10 {dimension_numbers = #tpu.dot_dimension_numbers<[1], [0], [0], [1], [0, 0, 1, 1], [], []>} : vector<2x32xbf16>, vector<32x128xbf16>, vector<2x128xf32> -> vector<2x128xf32>
    %20 = arith.addf %17, %19 : vector<2x128xf32>
    %cst_11 = arith.constant 5.000000e-01 : f32
    %21 = vector.broadcast %cst_11 : f32 to vector<2x128xf32>
    %22 = arith.mulf %21, %20 : vector<2x128xf32>
    %23 = arith.select %5, %20, %22 : vector<2x128xi1>, vector<2x128xf32>
    %24 = math.tanh %23 : vector<2x128xf32>
    %cst_12 = arith.constant 5.000000e-01 : f32
    %25 = vector.broadcast %cst_12 : f32 to vector<2x128xf32>
    %26 = arith.mulf %25, %24 : vector<2x128xf32>
    %cst_13 = arith.constant 5.000000e-01 : f32
    %27 = vector.broadcast %cst_13 : f32 to vector<2x128xf32>
    %28 = arith.addf %26, %27 : vector<2x128xf32>
    %29 = arith.select %5, %24, %28 : vector<2x128xi1>, vector<2x128xf32>
    %30 = vector.extract_strided_slice %29 {offsets = [0, 0], sizes = [2, 32], strides = [1, 1]} : vector<2x128xf32> to vector<2x32xf32>
    %31 = vector.extract_strided_slice %29 {offsets = [0, 32], sizes = [2, 32], strides = [1, 1]} : vector<2x128xf32> to vector<2x32xf32>
    %32 = vector.extract_strided_slice %29 {offsets = [0, 64], sizes = [2, 32], strides = [1, 1]} : vector<2x128xf32> to vector<2x32xf32>
    %33 = vector.extract_strided_slice %29 {offsets = [0, 96], sizes = [2, 32], strides = [1, 1]} : vector<2x128xf32> to vector<2x32xf32>
    %34 = arith.mulf %31, %16 : vector<2x32xf32>
    %35 = arith.mulf %30, %32 : vector<2x32xf32>
    %36 = arith.addf %34, %35 : vector<2x32xf32>
    %37 = math.tanh %36 : vector<2x32xf32>
    %38 = arith.mulf %33, %37 : vector<2x32xf32>
    %39 = vector.extract_strided_slice %14 {offsets = [2, 0], sizes = [2, 128], strides = [1, 1]} : vector<16x128xf32> to vector<2x128xf32>
    %40 = arith.truncf %38 : vector<2x32xf32> to vector<2x32xbf16>
    %cst_14 = arith.constant dense<0.000000e+00> : vector<2x128xf32>
    %41 = tpu.matmul %40, %9, %cst_14 {dimension_numbers = #tpu.dot_dimension_numbers<[1], [0], [0], [1], [0, 0, 1, 1], [], []>} : vector<2x32xbf16>, vector<32x128xbf16>, vector<2x128xf32> -> vector<2x128xf32>
    %42 = arith.addf %39, %41 : vector<2x128xf32>
    %cst_15 = arith.constant 5.000000e-01 : f32
    %43 = vector.broadcast %cst_15 : f32 to vector<2x128xf32>
    %44 = arith.mulf %43, %42 : vector<2x128xf32>
    %45 = arith.select %5, %42, %44 : vector<2x128xi1>, vector<2x128xf32>
    %46 = math.tanh %45 : vector<2x128xf32>
    %cst_16 = arith.constant 5.000000e-01 : f32
    %47 = vector.broadcast %cst_16 : f32 to vector<2x128xf32>
    %48 = arith.mulf %47, %46 : vector<2x128xf32>
    %cst_17 = arith.constant 5.000000e-01 : f32
    %49 = vector.broadcast %cst_17 : f32 to vector<2x128xf32>
    %50 = arith.addf %48, %49 : vector<2x128xf32>
    %51 = arith.select %5, %46, %50 : vector<2x128xi1>, vector<2x128xf32>
    %52 = vector.extract_strided_slice %51 {offsets = [0, 0], sizes = [2, 32], strides = [1, 1]} : vector<2x128xf32> to vector<2x32xf32>
    %53 = vector.extract_strided_slice %51 {offsets = [0, 32], sizes = [2, 32], strides = [1, 1]} : vector<2x128xf32> to vector<2x32xf32>
    %54 = vector.extract_strided_slice %51 {offsets = [0, 64], sizes = [2, 32], strides = [1, 1]} : vector<2x128xf32> to vector<2x32xf32>
    %55 = vector.extract_strided_slice %51 {offsets = [0, 96], sizes = [2, 32], strides = [1, 1]} : vector<2x128xf32> to vector<2x32xf32>
    %56 = arith.mulf %53, %36 : vector<2x32xf32>
    %57 = arith.mulf %52, %54 : vector<2x32xf32>
    %58 = arith.addf %56, %57 : vector<2x32xf32>
    %59 = math.tanh %58 : vector<2x32xf32>
    %60 = arith.mulf %55, %59 : vector<2x32xf32>
    %61 = vector.extract_strided_slice %14 {offsets = [4, 0], sizes = [2, 128], strides = [1, 1]} : vector<16x128xf32> to vector<2x128xf32>
    %62 = arith.truncf %60 : vector<2x32xf32> to vector<2x32xbf16>
    %cst_18 = arith.constant dense<0.000000e+00> : vector<2x128xf32>
    %63 = tpu.matmul %62, %9, %cst_18 {dimension_numbers = #tpu.dot_dimension_numbers<[1], [0], [0], [1], [0, 0, 1, 1], [], []>} : vector<2x32xbf16>, vector<32x128xbf16>, vector<2x128xf32> -> vector<2x128xf32>
    %64 = arith.addf %61, %63 : vector<2x128xf32>
    %cst_19 = arith.constant 5.000000e-01 : f32
    %65 = vector.broadcast %cst_19 : f32 to vector<2x128xf32>
    %66 = arith.mulf %65, %64 : vector<2x128xf32>
    %67 = arith.select %5, %64, %66 : vector<2x128xi1>, vector<2x128xf32>
    %68 = math.tanh %67 : vector<2x128xf32>
    %cst_20 = arith.constant 5.000000e-01 : f32
    %69 = vector.broadcast %cst_20 : f32 to vector<2x128xf32>
    %70 = arith.mulf %69, %68 : vector<2x128xf32>
    %cst_21 = arith.constant 5.000000e-01 : f32
    %71 = vector.broadcast %cst_21 : f32 to vector<2x128xf32>
    %72 = arith.addf %70, %71 : vector<2x128xf32>
    %73 = arith.select %5, %68, %72 : vector<2x128xi1>, vector<2x128xf32>
    %74 = vector.extract_strided_slice %73 {offsets = [0, 0], sizes = [2, 32], strides = [1, 1]} : vector<2x128xf32> to vector<2x32xf32>
    %75 = vector.extract_strided_slice %73 {offsets = [0, 32], sizes = [2, 32], strides = [1, 1]} : vector<2x128xf32> to vector<2x32xf32>
    %76 = vector.extract_strided_slice %73 {offsets = [0, 64], sizes = [2, 32], strides = [1, 1]} : vector<2x128xf32> to vector<2x32xf32>
    %77 = vector.extract_strided_slice %73 {offsets = [0, 96], sizes = [2, 32], strides = [1, 1]} : vector<2x128xf32> to vector<2x32xf32>
    %78 = arith.mulf %75, %58 : vector<2x32xf32>
    %79 = arith.mulf %74, %76 : vector<2x32xf32>
    %80 = arith.addf %78, %79 : vector<2x32xf32>
    %81 = math.tanh %80 : vector<2x32xf32>
    %82 = arith.mulf %77, %81 : vector<2x32xf32>
    %83 = vector.extract_strided_slice %14 {offsets = [6, 0], sizes = [2, 128], strides = [1, 1]} : vector<16x128xf32> to vector<2x128xf32>
    %84 = arith.truncf %82 : vector<2x32xf32> to vector<2x32xbf16>
    %cst_22 = arith.constant dense<0.000000e+00> : vector<2x128xf32>
    %85 = tpu.matmul %84, %9, %cst_22 {dimension_numbers = #tpu.dot_dimension_numbers<[1], [0], [0], [1], [0, 0, 1, 1], [], []>} : vector<2x32xbf16>, vector<32x128xbf16>, vector<2x128xf32> -> vector<2x128xf32>
    %86 = arith.addf %83, %85 : vector<2x128xf32>
    %cst_23 = arith.constant 5.000000e-01 : f32
    %87 = vector.broadcast %cst_23 : f32 to vector<2x128xf32>
    %88 = arith.mulf %87, %86 : vector<2x128xf32>
    %89 = arith.select %5, %86, %88 : vector<2x128xi1>, vector<2x128xf32>
    %90 = math.tanh %89 : vector<2x128xf32>
    %cst_24 = arith.constant 5.000000e-01 : f32
    %91 = vector.broadcast %cst_24 : f32 to vector<2x128xf32>
    %92 = arith.mulf %91, %90 : vector<2x128xf32>
    %cst_25 = arith.constant 5.000000e-01 : f32
    %93 = vector.broadcast %cst_25 : f32 to vector<2x128xf32>
    %94 = arith.addf %92, %93 : vector<2x128xf32>
    %95 = arith.select %5, %90, %94 : vector<2x128xi1>, vector<2x128xf32>
    %96 = vector.extract_strided_slice %95 {offsets = [0, 0], sizes = [2, 32], strides = [1, 1]} : vector<2x128xf32> to vector<2x32xf32>
    %97 = vector.extract_strided_slice %95 {offsets = [0, 32], sizes = [2, 32], strides = [1, 1]} : vector<2x128xf32> to vector<2x32xf32>
    %98 = vector.extract_strided_slice %95 {offsets = [0, 64], sizes = [2, 32], strides = [1, 1]} : vector<2x128xf32> to vector<2x32xf32>
    %99 = vector.extract_strided_slice %95 {offsets = [0, 96], sizes = [2, 32], strides = [1, 1]} : vector<2x128xf32> to vector<2x32xf32>
    %100 = arith.mulf %97, %80 : vector<2x32xf32>
    %101 = arith.mulf %96, %98 : vector<2x32xf32>
    %102 = arith.addf %100, %101 : vector<2x32xf32>
    %103 = math.tanh %102 : vector<2x32xf32>
    %104 = arith.mulf %99, %103 : vector<2x32xf32>
    %105 = vector.extract_strided_slice %14 {offsets = [8, 0], sizes = [2, 128], strides = [1, 1]} : vector<16x128xf32> to vector<2x128xf32>
    %106 = arith.truncf %104 : vector<2x32xf32> to vector<2x32xbf16>
    %cst_26 = arith.constant dense<0.000000e+00> : vector<2x128xf32>
    %107 = tpu.matmul %106, %9, %cst_26 {dimension_numbers = #tpu.dot_dimension_numbers<[1], [0], [0], [1], [0, 0, 1, 1], [], []>} : vector<2x32xbf16>, vector<32x128xbf16>, vector<2x128xf32> -> vector<2x128xf32>
    %108 = arith.addf %105, %107 : vector<2x128xf32>
    %cst_27 = arith.constant 5.000000e-01 : f32
    %109 = vector.broadcast %cst_27 : f32 to vector<2x128xf32>
    %110 = arith.mulf %109, %108 : vector<2x128xf32>
    %111 = arith.select %5, %108, %110 : vector<2x128xi1>, vector<2x128xf32>
    %112 = math.tanh %111 : vector<2x128xf32>
    %cst_28 = arith.constant 5.000000e-01 : f32
    %113 = vector.broadcast %cst_28 : f32 to vector<2x128xf32>
    %114 = arith.mulf %113, %112 : vector<2x128xf32>
    %cst_29 = arith.constant 5.000000e-01 : f32
    %115 = vector.broadcast %cst_29 : f32 to vector<2x128xf32>
    %116 = arith.addf %114, %115 : vector<2x128xf32>
    %117 = arith.select %5, %112, %116 : vector<2x128xi1>, vector<2x128xf32>
    %118 = vector.extract_strided_slice %117 {offsets = [0, 0], sizes = [2, 32], strides = [1, 1]} : vector<2x128xf32> to vector<2x32xf32>
    %119 = vector.extract_strided_slice %117 {offsets = [0, 32], sizes = [2, 32], strides = [1, 1]} : vector<2x128xf32> to vector<2x32xf32>
    %120 = vector.extract_strided_slice %117 {offsets = [0, 64], sizes = [2, 32], strides = [1, 1]} : vector<2x128xf32> to vector<2x32xf32>
    %121 = vector.extract_strided_slice %117 {offsets = [0, 96], sizes = [2, 32], strides = [1, 1]} : vector<2x128xf32> to vector<2x32xf32>
    %122 = arith.mulf %119, %102 : vector<2x32xf32>
    %123 = arith.mulf %118, %120 : vector<2x32xf32>
    %124 = arith.addf %122, %123 : vector<2x32xf32>
    %125 = math.tanh %124 : vector<2x32xf32>
    %126 = arith.mulf %121, %125 : vector<2x32xf32>
    %127 = vector.extract_strided_slice %14 {offsets = [10, 0], sizes = [2, 128], strides = [1, 1]} : vector<16x128xf32> to vector<2x128xf32>
    %128 = arith.truncf %126 : vector<2x32xf32> to vector<2x32xbf16>
    %cst_30 = arith.constant dense<0.000000e+00> : vector<2x128xf32>
    %129 = tpu.matmul %128, %9, %cst_30 {dimension_numbers = #tpu.dot_dimension_numbers<[1], [0], [0], [1], [0, 0, 1, 1], [], []>} : vector<2x32xbf16>, vector<32x128xbf16>, vector<2x128xf32> -> vector<2x128xf32>
    %130 = arith.addf %127, %129 : vector<2x128xf32>
    %cst_31 = arith.constant 5.000000e-01 : f32
    %131 = vector.broadcast %cst_31 : f32 to vector<2x128xf32>
    %132 = arith.mulf %131, %130 : vector<2x128xf32>
    %133 = arith.select %5, %130, %132 : vector<2x128xi1>, vector<2x128xf32>
    %134 = math.tanh %133 : vector<2x128xf32>
    %cst_32 = arith.constant 5.000000e-01 : f32
    %135 = vector.broadcast %cst_32 : f32 to vector<2x128xf32>
    %136 = arith.mulf %135, %134 : vector<2x128xf32>
    %cst_33 = arith.constant 5.000000e-01 : f32
    %137 = vector.broadcast %cst_33 : f32 to vector<2x128xf32>
    %138 = arith.addf %136, %137 : vector<2x128xf32>
    %139 = arith.select %5, %134, %138 : vector<2x128xi1>, vector<2x128xf32>
    %140 = vector.extract_strided_slice %139 {offsets = [0, 0], sizes = [2, 32], strides = [1, 1]} : vector<2x128xf32> to vector<2x32xf32>
    %141 = vector.extract_strided_slice %139 {offsets = [0, 32], sizes = [2, 32], strides = [1, 1]} : vector<2x128xf32> to vector<2x32xf32>
    %142 = vector.extract_strided_slice %139 {offsets = [0, 64], sizes = [2, 32], strides = [1, 1]} : vector<2x128xf32> to vector<2x32xf32>
    %143 = vector.extract_strided_slice %139 {offsets = [0, 96], sizes = [2, 32], strides = [1, 1]} : vector<2x128xf32> to vector<2x32xf32>
    %144 = arith.mulf %141, %124 : vector<2x32xf32>
    %145 = arith.mulf %140, %142 : vector<2x32xf32>
    %146 = arith.addf %144, %145 : vector<2x32xf32>
    %147 = math.tanh %146 : vector<2x32xf32>
    %148 = arith.mulf %143, %147 : vector<2x32xf32>
    %149 = vector.extract_strided_slice %14 {offsets = [12, 0], sizes = [2, 128], strides = [1, 1]} : vector<16x128xf32> to vector<2x128xf32>
    %150 = arith.truncf %148 : vector<2x32xf32> to vector<2x32xbf16>
    %cst_34 = arith.constant dense<0.000000e+00> : vector<2x128xf32>
    %151 = tpu.matmul %150, %9, %cst_34 {dimension_numbers = #tpu.dot_dimension_numbers<[1], [0], [0], [1], [0, 0, 1, 1], [], []>} : vector<2x32xbf16>, vector<32x128xbf16>, vector<2x128xf32> -> vector<2x128xf32>
    %152 = arith.addf %149, %151 : vector<2x128xf32>
    %cst_35 = arith.constant 5.000000e-01 : f32
    %153 = vector.broadcast %cst_35 : f32 to vector<2x128xf32>
    %154 = arith.mulf %153, %152 : vector<2x128xf32>
    %155 = arith.select %5, %152, %154 : vector<2x128xi1>, vector<2x128xf32>
    %156 = math.tanh %155 : vector<2x128xf32>
    %cst_36 = arith.constant 5.000000e-01 : f32
    %157 = vector.broadcast %cst_36 : f32 to vector<2x128xf32>
    %158 = arith.mulf %157, %156 : vector<2x128xf32>
    %cst_37 = arith.constant 5.000000e-01 : f32
    %159 = vector.broadcast %cst_37 : f32 to vector<2x128xf32>
    %160 = arith.addf %158, %159 : vector<2x128xf32>
    %161 = arith.select %5, %156, %160 : vector<2x128xi1>, vector<2x128xf32>
    %162 = vector.extract_strided_slice %161 {offsets = [0, 0], sizes = [2, 32], strides = [1, 1]} : vector<2x128xf32> to vector<2x32xf32>
    %163 = vector.extract_strided_slice %161 {offsets = [0, 32], sizes = [2, 32], strides = [1, 1]} : vector<2x128xf32> to vector<2x32xf32>
    %164 = vector.extract_strided_slice %161 {offsets = [0, 64], sizes = [2, 32], strides = [1, 1]} : vector<2x128xf32> to vector<2x32xf32>
    %165 = vector.extract_strided_slice %161 {offsets = [0, 96], sizes = [2, 32], strides = [1, 1]} : vector<2x128xf32> to vector<2x32xf32>
    %166 = arith.mulf %163, %146 : vector<2x32xf32>
    %167 = arith.mulf %162, %164 : vector<2x32xf32>
    %168 = arith.addf %166, %167 : vector<2x32xf32>
    %169 = math.tanh %168 : vector<2x32xf32>
    %170 = arith.mulf %165, %169 : vector<2x32xf32>
    %171 = vector.extract_strided_slice %14 {offsets = [14, 0], sizes = [2, 128], strides = [1, 1]} : vector<16x128xf32> to vector<2x128xf32>
    %172 = arith.truncf %170 : vector<2x32xf32> to vector<2x32xbf16>
    %cst_38 = arith.constant dense<0.000000e+00> : vector<2x128xf32>
    %173 = tpu.matmul %172, %9, %cst_38 {dimension_numbers = #tpu.dot_dimension_numbers<[1], [0], [0], [1], [0, 0, 1, 1], [], []>} : vector<2x32xbf16>, vector<32x128xbf16>, vector<2x128xf32> -> vector<2x128xf32>
    %174 = arith.addf %171, %173 : vector<2x128xf32>
    %cst_39 = arith.constant 5.000000e-01 : f32
    %175 = vector.broadcast %cst_39 : f32 to vector<2x128xf32>
    %176 = arith.mulf %175, %174 : vector<2x128xf32>
    %177 = arith.select %5, %174, %176 : vector<2x128xi1>, vector<2x128xf32>
    %178 = math.tanh %177 : vector<2x128xf32>
    %cst_40 = arith.constant 5.000000e-01 : f32
    %179 = vector.broadcast %cst_40 : f32 to vector<2x128xf32>
    %180 = arith.mulf %179, %178 : vector<2x128xf32>
    %cst_41 = arith.constant 5.000000e-01 : f32
    %181 = vector.broadcast %cst_41 : f32 to vector<2x128xf32>
    %182 = arith.addf %180, %181 : vector<2x128xf32>
    %183 = arith.select %5, %178, %182 : vector<2x128xi1>, vector<2x128xf32>
    %184 = vector.extract_strided_slice %183 {offsets = [0, 0], sizes = [2, 32], strides = [1, 1]} : vector<2x128xf32> to vector<2x32xf32>
    %185 = vector.extract_strided_slice %183 {offsets = [0, 32], sizes = [2, 32], strides = [1, 1]} : vector<2x128xf32> to vector<2x32xf32>
    %186 = vector.extract_strided_slice %183 {offsets = [0, 64], sizes = [2, 32], strides = [1, 1]} : vector<2x128xf32> to vector<2x32xf32>
    %187 = vector.extract_strided_slice %183 {offsets = [0, 96], sizes = [2, 32], strides = [1, 1]} : vector<2x128xf32> to vector<2x32xf32>
    %188 = arith.mulf %185, %168 : vector<2x32xf32>
    %189 = arith.mulf %184, %186 : vector<2x32xf32>
    %190 = arith.addf %188, %189 : vector<2x32xf32>
    %191 = math.tanh %190 : vector<2x32xf32>
    %192 = arith.mulf %187, %191 : vector<2x32xf32>
    %193 = tpu.concatenate %38, %60, %82, %104, %126, %148, %170, %192 in 0 : vector<2x32xf32>, vector<2x32xf32>, vector<2x32xf32>, vector<2x32xf32>, vector<2x32xf32>, vector<2x32xf32>, vector<2x32xf32>, vector<2x32xf32> -> vector<16x32xf32>
    %c0_42 = arith.constant 0 : index
    %c0_43 = arith.constant 0 : index
    %194 = vector.load %arg4[%c0_42, %c0_43] : memref<32x128xbf16, #tpu.memory_space<vmem>>, vector<32x128xbf16>
    %c0_44 = arith.constant 0 : index
    %c0_45 = arith.constant 0 : index
    %195 = vector.load %arg5[%c0_44, %c0_45] : memref<32x128xbf16, #tpu.memory_space<vmem>>, vector<32x128xbf16>
    %c0_46 = arith.constant 0 : index
    %c0_47 = arith.constant 0 : index
    %196 = vector.load %arg6[%c0_46, %c0_47] : memref<1x128xf32, #tpu.memory_space<vmem>>, vector<1x128xf32>
    %197 = arith.truncf %193 : vector<16x32xf32> to vector<16x32xbf16>
    %cst_48 = arith.constant dense<0.000000e+00> : vector<16x128xf32>
    %198 = tpu.matmul %197, %194, %cst_48 {dimension_numbers = #tpu.dot_dimension_numbers<[1], [0], [0], [1], [0, 0, 1, 1], [], []>} : vector<16x32xbf16>, vector<32x128xbf16>, vector<16x128xf32> -> vector<16x128xf32>
    %199 = vector.broadcast %196 : vector<1x128xf32> to vector<16x128xf32>
    %200 = arith.addf %198, %199 : vector<16x128xf32>
    %cst_49 = arith.constant 0.000000e+00 : f32
    %201 = vector.broadcast %cst_49 : f32 to vector<2x32xf32>
    %cst_50 = arith.constant 0.000000e+00 : f32
    %202 = vector.broadcast %cst_50 : f32 to vector<2x32xf32>
    %203 = vector.extract_strided_slice %200 {offsets = [0, 0], sizes = [2, 128], strides = [1, 1]} : vector<16x128xf32> to vector<2x128xf32>
    %204 = arith.truncf %201 : vector<2x32xf32> to vector<2x32xbf16>
    %cst_51 = arith.constant dense<0.000000e+00> : vector<2x128xf32>
    %205 = tpu.matmul %204, %195, %cst_51 {dimension_numbers = #tpu.dot_dimension_numbers<[1], [0], [0], [1], [0, 0, 1, 1], [], []>} : vector<2x32xbf16>, vector<32x128xbf16>, vector<2x128xf32> -> vector<2x128xf32>
    %206 = arith.addf %203, %205 : vector<2x128xf32>
    %cst_52 = arith.constant 5.000000e-01 : f32
    %207 = vector.broadcast %cst_52 : f32 to vector<2x128xf32>
    %208 = arith.mulf %207, %206 : vector<2x128xf32>
    %209 = arith.select %5, %206, %208 : vector<2x128xi1>, vector<2x128xf32>
    %210 = math.tanh %209 : vector<2x128xf32>
    %cst_53 = arith.constant 5.000000e-01 : f32
    %211 = vector.broadcast %cst_53 : f32 to vector<2x128xf32>
    %212 = arith.mulf %211, %210 : vector<2x128xf32>
    %cst_54 = arith.constant 5.000000e-01 : f32
    %213 = vector.broadcast %cst_54 : f32 to vector<2x128xf32>
    %214 = arith.addf %212, %213 : vector<2x128xf32>
    %215 = arith.select %5, %210, %214 : vector<2x128xi1>, vector<2x128xf32>
    %216 = vector.extract_strided_slice %215 {offsets = [0, 0], sizes = [2, 32], strides = [1, 1]} : vector<2x128xf32> to vector<2x32xf32>
    %217 = vector.extract_strided_slice %215 {offsets = [0, 32], sizes = [2, 32], strides = [1, 1]} : vector<2x128xf32> to vector<2x32xf32>
    %218 = vector.extract_strided_slice %215 {offsets = [0, 64], sizes = [2, 32], strides = [1, 1]} : vector<2x128xf32> to vector<2x32xf32>
    %219 = vector.extract_strided_slice %215 {offsets = [0, 96], sizes = [2, 32], strides = [1, 1]} : vector<2x128xf32> to vector<2x32xf32>
    %220 = arith.mulf %217, %202 : vector<2x32xf32>
    %221 = arith.mulf %216, %218 : vector<2x32xf32>
    %222 = arith.addf %220, %221 : vector<2x32xf32>
    %223 = math.tanh %222 : vector<2x32xf32>
    %224 = arith.mulf %219, %223 : vector<2x32xf32>
    %225 = vector.extract_strided_slice %200 {offsets = [2, 0], sizes = [2, 128], strides = [1, 1]} : vector<16x128xf32> to vector<2x128xf32>
    %226 = arith.truncf %224 : vector<2x32xf32> to vector<2x32xbf16>
    %cst_55 = arith.constant dense<0.000000e+00> : vector<2x128xf32>
    %227 = tpu.matmul %226, %195, %cst_55 {dimension_numbers = #tpu.dot_dimension_numbers<[1], [0], [0], [1], [0, 0, 1, 1], [], []>} : vector<2x32xbf16>, vector<32x128xbf16>, vector<2x128xf32> -> vector<2x128xf32>
    %228 = arith.addf %225, %227 : vector<2x128xf32>
    %cst_56 = arith.constant 5.000000e-01 : f32
    %229 = vector.broadcast %cst_56 : f32 to vector<2x128xf32>
    %230 = arith.mulf %229, %228 : vector<2x128xf32>
    %231 = arith.select %5, %228, %230 : vector<2x128xi1>, vector<2x128xf32>
    %232 = math.tanh %231 : vector<2x128xf32>
    %cst_57 = arith.constant 5.000000e-01 : f32
    %233 = vector.broadcast %cst_57 : f32 to vector<2x128xf32>
    %234 = arith.mulf %233, %232 : vector<2x128xf32>
    %cst_58 = arith.constant 5.000000e-01 : f32
    %235 = vector.broadcast %cst_58 : f32 to vector<2x128xf32>
    %236 = arith.addf %234, %235 : vector<2x128xf32>
    %237 = arith.select %5, %232, %236 : vector<2x128xi1>, vector<2x128xf32>
    %238 = vector.extract_strided_slice %237 {offsets = [0, 0], sizes = [2, 32], strides = [1, 1]} : vector<2x128xf32> to vector<2x32xf32>
    %239 = vector.extract_strided_slice %237 {offsets = [0, 32], sizes = [2, 32], strides = [1, 1]} : vector<2x128xf32> to vector<2x32xf32>
    %240 = vector.extract_strided_slice %237 {offsets = [0, 64], sizes = [2, 32], strides = [1, 1]} : vector<2x128xf32> to vector<2x32xf32>
    %241 = vector.extract_strided_slice %237 {offsets = [0, 96], sizes = [2, 32], strides = [1, 1]} : vector<2x128xf32> to vector<2x32xf32>
    %242 = arith.mulf %239, %222 : vector<2x32xf32>
    %243 = arith.mulf %238, %240 : vector<2x32xf32>
    %244 = arith.addf %242, %243 : vector<2x32xf32>
    %245 = math.tanh %244 : vector<2x32xf32>
    %246 = arith.mulf %241, %245 : vector<2x32xf32>
    %247 = vector.extract_strided_slice %200 {offsets = [4, 0], sizes = [2, 128], strides = [1, 1]} : vector<16x128xf32> to vector<2x128xf32>
    %248 = arith.truncf %246 : vector<2x32xf32> to vector<2x32xbf16>
    %cst_59 = arith.constant dense<0.000000e+00> : vector<2x128xf32>
    %249 = tpu.matmul %248, %195, %cst_59 {dimension_numbers = #tpu.dot_dimension_numbers<[1], [0], [0], [1], [0, 0, 1, 1], [], []>} : vector<2x32xbf16>, vector<32x128xbf16>, vector<2x128xf32> -> vector<2x128xf32>
    %250 = arith.addf %247, %249 : vector<2x128xf32>
    %cst_60 = arith.constant 5.000000e-01 : f32
    %251 = vector.broadcast %cst_60 : f32 to vector<2x128xf32>
    %252 = arith.mulf %251, %250 : vector<2x128xf32>
    %253 = arith.select %5, %250, %252 : vector<2x128xi1>, vector<2x128xf32>
    %254 = math.tanh %253 : vector<2x128xf32>
    %cst_61 = arith.constant 5.000000e-01 : f32
    %255 = vector.broadcast %cst_61 : f32 to vector<2x128xf32>
    %256 = arith.mulf %255, %254 : vector<2x128xf32>
    %cst_62 = arith.constant 5.000000e-01 : f32
    %257 = vector.broadcast %cst_62 : f32 to vector<2x128xf32>
    %258 = arith.addf %256, %257 : vector<2x128xf32>
    %259 = arith.select %5, %254, %258 : vector<2x128xi1>, vector<2x128xf32>
    %260 = vector.extract_strided_slice %259 {offsets = [0, 0], sizes = [2, 32], strides = [1, 1]} : vector<2x128xf32> to vector<2x32xf32>
    %261 = vector.extract_strided_slice %259 {offsets = [0, 32], sizes = [2, 32], strides = [1, 1]} : vector<2x128xf32> to vector<2x32xf32>
    %262 = vector.extract_strided_slice %259 {offsets = [0, 64], sizes = [2, 32], strides = [1, 1]} : vector<2x128xf32> to vector<2x32xf32>
    %263 = vector.extract_strided_slice %259 {offsets = [0, 96], sizes = [2, 32], strides = [1, 1]} : vector<2x128xf32> to vector<2x32xf32>
    %264 = arith.mulf %261, %244 : vector<2x32xf32>
    %265 = arith.mulf %260, %262 : vector<2x32xf32>
    %266 = arith.addf %264, %265 : vector<2x32xf32>
    %267 = math.tanh %266 : vector<2x32xf32>
    %268 = arith.mulf %263, %267 : vector<2x32xf32>
    %269 = vector.extract_strided_slice %200 {offsets = [6, 0], sizes = [2, 128], strides = [1, 1]} : vector<16x128xf32> to vector<2x128xf32>
    %270 = arith.truncf %268 : vector<2x32xf32> to vector<2x32xbf16>
    %cst_63 = arith.constant dense<0.000000e+00> : vector<2x128xf32>
    %271 = tpu.matmul %270, %195, %cst_63 {dimension_numbers = #tpu.dot_dimension_numbers<[1], [0], [0], [1], [0, 0, 1, 1], [], []>} : vector<2x32xbf16>, vector<32x128xbf16>, vector<2x128xf32> -> vector<2x128xf32>
    %272 = arith.addf %269, %271 : vector<2x128xf32>
    %cst_64 = arith.constant 5.000000e-01 : f32
    %273 = vector.broadcast %cst_64 : f32 to vector<2x128xf32>
    %274 = arith.mulf %273, %272 : vector<2x128xf32>
    %275 = arith.select %5, %272, %274 : vector<2x128xi1>, vector<2x128xf32>
    %276 = math.tanh %275 : vector<2x128xf32>
    %cst_65 = arith.constant 5.000000e-01 : f32
    %277 = vector.broadcast %cst_65 : f32 to vector<2x128xf32>
    %278 = arith.mulf %277, %276 : vector<2x128xf32>
    %cst_66 = arith.constant 5.000000e-01 : f32
    %279 = vector.broadcast %cst_66 : f32 to vector<2x128xf32>
    %280 = arith.addf %278, %279 : vector<2x128xf32>
    %281 = arith.select %5, %276, %280 : vector<2x128xi1>, vector<2x128xf32>
    %282 = vector.extract_strided_slice %281 {offsets = [0, 0], sizes = [2, 32], strides = [1, 1]} : vector<2x128xf32> to vector<2x32xf32>
    %283 = vector.extract_strided_slice %281 {offsets = [0, 32], sizes = [2, 32], strides = [1, 1]} : vector<2x128xf32> to vector<2x32xf32>
    %284 = vector.extract_strided_slice %281 {offsets = [0, 64], sizes = [2, 32], strides = [1, 1]} : vector<2x128xf32> to vector<2x32xf32>
    %285 = vector.extract_strided_slice %281 {offsets = [0, 96], sizes = [2, 32], strides = [1, 1]} : vector<2x128xf32> to vector<2x32xf32>
    %286 = arith.mulf %283, %266 : vector<2x32xf32>
    %287 = arith.mulf %282, %284 : vector<2x32xf32>
    %288 = arith.addf %286, %287 : vector<2x32xf32>
    %289 = math.tanh %288 : vector<2x32xf32>
    %290 = arith.mulf %285, %289 : vector<2x32xf32>
    %291 = vector.extract_strided_slice %200 {offsets = [8, 0], sizes = [2, 128], strides = [1, 1]} : vector<16x128xf32> to vector<2x128xf32>
    %292 = arith.truncf %290 : vector<2x32xf32> to vector<2x32xbf16>
    %cst_67 = arith.constant dense<0.000000e+00> : vector<2x128xf32>
    %293 = tpu.matmul %292, %195, %cst_67 {dimension_numbers = #tpu.dot_dimension_numbers<[1], [0], [0], [1], [0, 0, 1, 1], [], []>} : vector<2x32xbf16>, vector<32x128xbf16>, vector<2x128xf32> -> vector<2x128xf32>
    %294 = arith.addf %291, %293 : vector<2x128xf32>
    %cst_68 = arith.constant 5.000000e-01 : f32
    %295 = vector.broadcast %cst_68 : f32 to vector<2x128xf32>
    %296 = arith.mulf %295, %294 : vector<2x128xf32>
    %297 = arith.select %5, %294, %296 : vector<2x128xi1>, vector<2x128xf32>
    %298 = math.tanh %297 : vector<2x128xf32>
    %cst_69 = arith.constant 5.000000e-01 : f32
    %299 = vector.broadcast %cst_69 : f32 to vector<2x128xf32>
    %300 = arith.mulf %299, %298 : vector<2x128xf32>
    %cst_70 = arith.constant 5.000000e-01 : f32
    %301 = vector.broadcast %cst_70 : f32 to vector<2x128xf32>
    %302 = arith.addf %300, %301 : vector<2x128xf32>
    %303 = arith.select %5, %298, %302 : vector<2x128xi1>, vector<2x128xf32>
    %304 = vector.extract_strided_slice %303 {offsets = [0, 0], sizes = [2, 32], strides = [1, 1]} : vector<2x128xf32> to vector<2x32xf32>
    %305 = vector.extract_strided_slice %303 {offsets = [0, 32], sizes = [2, 32], strides = [1, 1]} : vector<2x128xf32> to vector<2x32xf32>
    %306 = vector.extract_strided_slice %303 {offsets = [0, 64], sizes = [2, 32], strides = [1, 1]} : vector<2x128xf32> to vector<2x32xf32>
    %307 = vector.extract_strided_slice %303 {offsets = [0, 96], sizes = [2, 32], strides = [1, 1]} : vector<2x128xf32> to vector<2x32xf32>
    %308 = arith.mulf %305, %288 : vector<2x32xf32>
    %309 = arith.mulf %304, %306 : vector<2x32xf32>
    %310 = arith.addf %308, %309 : vector<2x32xf32>
    %311 = math.tanh %310 : vector<2x32xf32>
    %312 = arith.mulf %307, %311 : vector<2x32xf32>
    %313 = vector.extract_strided_slice %200 {offsets = [10, 0], sizes = [2, 128], strides = [1, 1]} : vector<16x128xf32> to vector<2x128xf32>
    %314 = arith.truncf %312 : vector<2x32xf32> to vector<2x32xbf16>
    %cst_71 = arith.constant dense<0.000000e+00> : vector<2x128xf32>
    %315 = tpu.matmul %314, %195, %cst_71 {dimension_numbers = #tpu.dot_dimension_numbers<[1], [0], [0], [1], [0, 0, 1, 1], [], []>} : vector<2x32xbf16>, vector<32x128xbf16>, vector<2x128xf32> -> vector<2x128xf32>
    %316 = arith.addf %313, %315 : vector<2x128xf32>
    %cst_72 = arith.constant 5.000000e-01 : f32
    %317 = vector.broadcast %cst_72 : f32 to vector<2x128xf32>
    %318 = arith.mulf %317, %316 : vector<2x128xf32>
    %319 = arith.select %5, %316, %318 : vector<2x128xi1>, vector<2x128xf32>
    %320 = math.tanh %319 : vector<2x128xf32>
    %cst_73 = arith.constant 5.000000e-01 : f32
    %321 = vector.broadcast %cst_73 : f32 to vector<2x128xf32>
    %322 = arith.mulf %321, %320 : vector<2x128xf32>
    %cst_74 = arith.constant 5.000000e-01 : f32
    %323 = vector.broadcast %cst_74 : f32 to vector<2x128xf32>
    %324 = arith.addf %322, %323 : vector<2x128xf32>
    %325 = arith.select %5, %320, %324 : vector<2x128xi1>, vector<2x128xf32>
    %326 = vector.extract_strided_slice %325 {offsets = [0, 0], sizes = [2, 32], strides = [1, 1]} : vector<2x128xf32> to vector<2x32xf32>
    %327 = vector.extract_strided_slice %325 {offsets = [0, 32], sizes = [2, 32], strides = [1, 1]} : vector<2x128xf32> to vector<2x32xf32>
    %328 = vector.extract_strided_slice %325 {offsets = [0, 64], sizes = [2, 32], strides = [1, 1]} : vector<2x128xf32> to vector<2x32xf32>
    %329 = vector.extract_strided_slice %325 {offsets = [0, 96], sizes = [2, 32], strides = [1, 1]} : vector<2x128xf32> to vector<2x32xf32>
    %330 = arith.mulf %327, %310 : vector<2x32xf32>
    %331 = arith.mulf %326, %328 : vector<2x32xf32>
    %332 = arith.addf %330, %331 : vector<2x32xf32>
    %333 = math.tanh %332 : vector<2x32xf32>
    %334 = arith.mulf %329, %333 : vector<2x32xf32>
    %335 = vector.extract_strided_slice %200 {offsets = [12, 0], sizes = [2, 128], strides = [1, 1]} : vector<16x128xf32> to vector<2x128xf32>
    %336 = arith.truncf %334 : vector<2x32xf32> to vector<2x32xbf16>
    %cst_75 = arith.constant dense<0.000000e+00> : vector<2x128xf32>
    %337 = tpu.matmul %336, %195, %cst_75 {dimension_numbers = #tpu.dot_dimension_numbers<[1], [0], [0], [1], [0, 0, 1, 1], [], []>} : vector<2x32xbf16>, vector<32x128xbf16>, vector<2x128xf32> -> vector<2x128xf32>
    %338 = arith.addf %335, %337 : vector<2x128xf32>
    %cst_76 = arith.constant 5.000000e-01 : f32
    %339 = vector.broadcast %cst_76 : f32 to vector<2x128xf32>
    %340 = arith.mulf %339, %338 : vector<2x128xf32>
    %341 = arith.select %5, %338, %340 : vector<2x128xi1>, vector<2x128xf32>
    %342 = math.tanh %341 : vector<2x128xf32>
    %cst_77 = arith.constant 5.000000e-01 : f32
    %343 = vector.broadcast %cst_77 : f32 to vector<2x128xf32>
    %344 = arith.mulf %343, %342 : vector<2x128xf32>
    %cst_78 = arith.constant 5.000000e-01 : f32
    %345 = vector.broadcast %cst_78 : f32 to vector<2x128xf32>
    %346 = arith.addf %344, %345 : vector<2x128xf32>
    %347 = arith.select %5, %342, %346 : vector<2x128xi1>, vector<2x128xf32>
    %348 = vector.extract_strided_slice %347 {offsets = [0, 0], sizes = [2, 32], strides = [1, 1]} : vector<2x128xf32> to vector<2x32xf32>
    %349 = vector.extract_strided_slice %347 {offsets = [0, 32], sizes = [2, 32], strides = [1, 1]} : vector<2x128xf32> to vector<2x32xf32>
    %350 = vector.extract_strided_slice %347 {offsets = [0, 64], sizes = [2, 32], strides = [1, 1]} : vector<2x128xf32> to vector<2x32xf32>
    %351 = vector.extract_strided_slice %347 {offsets = [0, 96], sizes = [2, 32], strides = [1, 1]} : vector<2x128xf32> to vector<2x32xf32>
    %352 = arith.mulf %349, %332 : vector<2x32xf32>
    %353 = arith.mulf %348, %350 : vector<2x32xf32>
    %354 = arith.addf %352, %353 : vector<2x32xf32>
    %355 = math.tanh %354 : vector<2x32xf32>
    %356 = arith.mulf %351, %355 : vector<2x32xf32>
    %357 = vector.extract_strided_slice %200 {offsets = [14, 0], sizes = [2, 128], strides = [1, 1]} : vector<16x128xf32> to vector<2x128xf32>
    %358 = arith.truncf %356 : vector<2x32xf32> to vector<2x32xbf16>
    %cst_79 = arith.constant dense<0.000000e+00> : vector<2x128xf32>
    %359 = tpu.matmul %358, %195, %cst_79 {dimension_numbers = #tpu.dot_dimension_numbers<[1], [0], [0], [1], [0, 0, 1, 1], [], []>} : vector<2x32xbf16>, vector<32x128xbf16>, vector<2x128xf32> -> vector<2x128xf32>
    %360 = arith.addf %357, %359 : vector<2x128xf32>
    %cst_80 = arith.constant 5.000000e-01 : f32
    %361 = vector.broadcast %cst_80 : f32 to vector<2x128xf32>
    %362 = arith.mulf %361, %360 : vector<2x128xf32>
    %363 = arith.select %5, %360, %362 : vector<2x128xi1>, vector<2x128xf32>
    %364 = math.tanh %363 : vector<2x128xf32>
    %cst_81 = arith.constant 5.000000e-01 : f32
    %365 = vector.broadcast %cst_81 : f32 to vector<2x128xf32>
    %366 = arith.mulf %365, %364 : vector<2x128xf32>
    %cst_82 = arith.constant 5.000000e-01 : f32
    %367 = vector.broadcast %cst_82 : f32 to vector<2x128xf32>
    %368 = arith.addf %366, %367 : vector<2x128xf32>
    %369 = arith.select %5, %364, %368 : vector<2x128xi1>, vector<2x128xf32>
    %370 = vector.extract_strided_slice %369 {offsets = [0, 0], sizes = [2, 32], strides = [1, 1]} : vector<2x128xf32> to vector<2x32xf32>
    %371 = vector.extract_strided_slice %369 {offsets = [0, 32], sizes = [2, 32], strides = [1, 1]} : vector<2x128xf32> to vector<2x32xf32>
    %372 = vector.extract_strided_slice %369 {offsets = [0, 64], sizes = [2, 32], strides = [1, 1]} : vector<2x128xf32> to vector<2x32xf32>
    %373 = vector.extract_strided_slice %369 {offsets = [0, 96], sizes = [2, 32], strides = [1, 1]} : vector<2x128xf32> to vector<2x32xf32>
    %374 = arith.mulf %371, %354 : vector<2x32xf32>
    %375 = arith.mulf %370, %372 : vector<2x32xf32>
    %376 = arith.addf %374, %375 : vector<2x32xf32>
    %377 = math.tanh %376 : vector<2x32xf32>
    %378 = arith.mulf %373, %377 : vector<2x32xf32>
    %379 = tpu.concatenate %224, %246, %268, %290, %312, %334, %356, %378 in 0 : vector<2x32xf32>, vector<2x32xf32>, vector<2x32xf32>, vector<2x32xf32>, vector<2x32xf32>, vector<2x32xf32>, vector<2x32xf32>, vector<2x32xf32> -> vector<16x32xf32>
    %380 = arith.truncf %379 : vector<16x32xf32> to vector<16x32xbf16>
    %c0_83 = arith.constant 0 : index
    %c0_84 = arith.constant 0 : index
    %381 = vector.load %arg7[%c0_83, %c0_84] : memref<32x96xbf16, #tpu.memory_space<vmem>>, vector<32x96xbf16>
    %cst_85 = arith.constant dense<0.000000e+00> : vector<16x96xf32>
    %382 = tpu.matmul %380, %381, %cst_85 {dimension_numbers = #tpu.dot_dimension_numbers<[1], [0], [0], [1], [0, 0, 1, 1], [], []>} : vector<16x32xbf16>, vector<32x96xbf16>, vector<16x96xf32> -> vector<16x96xf32>
    %c0_86 = arith.constant 0 : index
    %c0_87 = arith.constant 0 : index
    %383 = vector.load %arg8[%c0_86, %c0_87] : memref<1x96xf32, #tpu.memory_space<vmem>>, vector<1x96xf32>
    %384 = vector.broadcast %383 : vector<1x96xf32> to vector<16x96xf32>
    %385 = arith.addf %382, %384 : vector<16x96xf32>
    %386 = vector.extract_strided_slice %385 {offsets = [14, 0], sizes = [2, 32], strides = [1, 1]} : vector<16x96xf32> to vector<2x32xf32>
    %387 = vector.extract_strided_slice %385 {offsets = [0, 32], sizes = [16, 32], strides = [1, 1]} : vector<16x96xf32> to vector<16x32xf32>
    %388 = vector.extract_strided_slice %385 {offsets = [0, 64], sizes = [16, 32], strides = [1, 1]} : vector<16x96xf32> to vector<16x32xf32>
    %389 = tpu.concatenate %386, %386, %386, %386, %386, %386, %386, %386 in 0 : vector<2x32xf32>, vector<2x32xf32>, vector<2x32xf32>, vector<2x32xf32>, vector<2x32xf32>, vector<2x32xf32>, vector<2x32xf32>, vector<2x32xf32> -> vector<16x32xf32>
    %390 = arith.mulf %389, %387 : vector<16x32xf32>
    %391 = arith.truncf %390 : vector<16x32xf32> to vector<16x32xbf16>
    %c0_88 = arith.constant 0 : index
    %c0_89 = arith.constant 0 : index
    %392 = vector.load %arg15[%c0_88, %c0_89] : memref<32x4xbf16, #tpu.memory_space<vmem>>, vector<32x4xbf16>
    %cst_90 = arith.constant dense<0.000000e+00> : vector<16x4xf32>
    %393 = tpu.matmul %391, %392, %cst_90 {dimension_numbers = #tpu.dot_dimension_numbers<[1], [0], [0], [1], [0, 0, 1, 1], [], []>} : vector<16x32xbf16>, vector<32x4xbf16>, vector<16x4xf32> -> vector<16x4xf32>
    %394 = vector.extract_strided_slice %393 {offsets = [0, 0], sizes = [2, 4], strides = [1, 1]} : vector<16x4xf32> to vector<2x4xf32>
    %395 = vector.extract_strided_slice %393 {offsets = [2, 0], sizes = [2, 4], strides = [1, 1]} : vector<16x4xf32> to vector<2x4xf32>
    %396 = arith.maximumf %394, %395 : vector<2x4xf32>
    %397 = vector.extract_strided_slice %393 {offsets = [4, 0], sizes = [2, 4], strides = [1, 1]} : vector<16x4xf32> to vector<2x4xf32>
    %398 = arith.maximumf %396, %397 : vector<2x4xf32>
    %399 = vector.extract_strided_slice %393 {offsets = [6, 0], sizes = [2, 4], strides = [1, 1]} : vector<16x4xf32> to vector<2x4xf32>
    %400 = arith.maximumf %398, %399 : vector<2x4xf32>
    %401 = vector.extract_strided_slice %393 {offsets = [8, 0], sizes = [2, 4], strides = [1, 1]} : vector<16x4xf32> to vector<2x4xf32>
    %402 = arith.maximumf %400, %401 : vector<2x4xf32>
    %403 = vector.extract_strided_slice %393 {offsets = [10, 0], sizes = [2, 4], strides = [1, 1]} : vector<16x4xf32> to vector<2x4xf32>
    %404 = arith.maximumf %402, %403 : vector<2x4xf32>
    %405 = vector.extract_strided_slice %393 {offsets = [12, 0], sizes = [2, 4], strides = [1, 1]} : vector<16x4xf32> to vector<2x4xf32>
    %406 = arith.maximumf %404, %405 : vector<2x4xf32>
    %407 = vector.extract_strided_slice %393 {offsets = [14, 0], sizes = [2, 4], strides = [1, 1]} : vector<16x4xf32> to vector<2x4xf32>
    %408 = arith.maximumf %406, %407 : vector<2x4xf32>
    %409 = tpu.concatenate %408, %408, %408, %408, %408, %408, %408, %408 in 0 : vector<2x4xf32>, vector<2x4xf32>, vector<2x4xf32>, vector<2x4xf32>, vector<2x4xf32>, vector<2x4xf32>, vector<2x4xf32>, vector<2x4xf32> -> vector<16x4xf32>
    %410 = arith.subf %393, %409 : vector<16x4xf32>
    %411 = math.exp %410 : vector<16x4xf32>
    %412 = vector.extract_strided_slice %411 {offsets = [0, 0], sizes = [2, 4], strides = [1, 1]} : vector<16x4xf32> to vector<2x4xf32>
    %413 = vector.extract_strided_slice %411 {offsets = [2, 0], sizes = [2, 4], strides = [1, 1]} : vector<16x4xf32> to vector<2x4xf32>
    %414 = arith.addf %412, %413 : vector<2x4xf32>
    %415 = vector.extract_strided_slice %411 {offsets = [4, 0], sizes = [2, 4], strides = [1, 1]} : vector<16x4xf32> to vector<2x4xf32>
    %416 = arith.addf %414, %415 : vector<2x4xf32>
    %417 = vector.extract_strided_slice %411 {offsets = [6, 0], sizes = [2, 4], strides = [1, 1]} : vector<16x4xf32> to vector<2x4xf32>
    %418 = arith.addf %416, %417 : vector<2x4xf32>
    %419 = vector.extract_strided_slice %411 {offsets = [8, 0], sizes = [2, 4], strides = [1, 1]} : vector<16x4xf32> to vector<2x4xf32>
    %420 = arith.addf %418, %419 : vector<2x4xf32>
    %421 = vector.extract_strided_slice %411 {offsets = [10, 0], sizes = [2, 4], strides = [1, 1]} : vector<16x4xf32> to vector<2x4xf32>
    %422 = arith.addf %420, %421 : vector<2x4xf32>
    %423 = vector.extract_strided_slice %411 {offsets = [12, 0], sizes = [2, 4], strides = [1, 1]} : vector<16x4xf32> to vector<2x4xf32>
    %424 = arith.addf %422, %423 : vector<2x4xf32>
    %425 = vector.extract_strided_slice %411 {offsets = [14, 0], sizes = [2, 4], strides = [1, 1]} : vector<16x4xf32> to vector<2x4xf32>
    %426 = arith.addf %424, %425 : vector<2x4xf32>
    %427 = tpu.reciprocal %426 {approx = true} : vector<2x4xf32> -> vector<2x4xf32>
    %428 = tpu.concatenate %427, %427, %427, %427, %427, %427, %427, %427 in 0 : vector<2x4xf32>, vector<2x4xf32>, vector<2x4xf32>, vector<2x4xf32>, vector<2x4xf32>, vector<2x4xf32>, vector<2x4xf32>, vector<2x4xf32> -> vector<16x4xf32>
    %429 = arith.mulf %411, %428 : vector<16x4xf32>
    %430 = arith.truncf %429 : vector<16x4xf32> to vector<16x4xbf16>
    %c0_91 = arith.constant 0 : index
    %c0_92 = arith.constant 0 : index
    %431 = vector.load %arg16[%c0_91, %c0_92] : memref<4x32xbf16, #tpu.memory_space<vmem>>, vector<4x32xbf16>
    %cst_93 = arith.constant dense<0.000000e+00> : vector<16x32xf32>
    %432 = tpu.matmul %430, %431, %cst_93 {dimension_numbers = #tpu.dot_dimension_numbers<[1], [0], [0], [1], [0, 0, 1, 1], [], []>} : vector<16x4xbf16>, vector<4x32xbf16>, vector<16x32xf32> -> vector<16x32xf32>
    %433 = arith.mulf %432, %388 : vector<16x32xf32>
    %434 = vector.extract_strided_slice %433 {offsets = [0, 0], sizes = [2, 32], strides = [1, 1]} : vector<16x32xf32> to vector<2x32xf32>
    %435 = vector.extract_strided_slice %433 {offsets = [2, 0], sizes = [2, 32], strides = [1, 1]} : vector<16x32xf32> to vector<2x32xf32>
    %436 = arith.addf %434, %435 : vector<2x32xf32>
    %437 = vector.extract_strided_slice %433 {offsets = [4, 0], sizes = [2, 32], strides = [1, 1]} : vector<16x32xf32> to vector<2x32xf32>
    %438 = arith.addf %436, %437 : vector<2x32xf32>
    %439 = vector.extract_strided_slice %433 {offsets = [6, 0], sizes = [2, 32], strides = [1, 1]} : vector<16x32xf32> to vector<2x32xf32>
    %440 = arith.addf %438, %439 : vector<2x32xf32>
    %441 = vector.extract_strided_slice %433 {offsets = [8, 0], sizes = [2, 32], strides = [1, 1]} : vector<16x32xf32> to vector<2x32xf32>
    %442 = arith.addf %440, %441 : vector<2x32xf32>
    %443 = vector.extract_strided_slice %433 {offsets = [10, 0], sizes = [2, 32], strides = [1, 1]} : vector<16x32xf32> to vector<2x32xf32>
    %444 = arith.addf %442, %443 : vector<2x32xf32>
    %445 = vector.extract_strided_slice %433 {offsets = [12, 0], sizes = [2, 32], strides = [1, 1]} : vector<16x32xf32> to vector<2x32xf32>
    %446 = arith.addf %444, %445 : vector<2x32xf32>
    %447 = vector.extract_strided_slice %433 {offsets = [14, 0], sizes = [2, 32], strides = [1, 1]} : vector<16x32xf32> to vector<2x32xf32>
    %448 = arith.addf %446, %447 : vector<2x32xf32>
    %449 = arith.truncf %448 : vector<2x32xf32> to vector<2x32xbf16>
    %c0_94 = arith.constant 0 : index
    %c0_95 = arith.constant 0 : index
    %450 = vector.load %arg9[%c0_94, %c0_95] : memref<32x32xbf16, #tpu.memory_space<vmem>>, vector<32x32xbf16>
    %cst_96 = arith.constant dense<0.000000e+00> : vector<2x32xf32>
    %451 = tpu.matmul %449, %450, %cst_96 {dimension_numbers = #tpu.dot_dimension_numbers<[1], [0], [0], [1], [0, 0, 1, 1], [], []>} : vector<2x32xbf16>, vector<32x32xbf16>, vector<2x32xf32> -> vector<2x32xf32>
    %c0_97 = arith.constant 0 : index
    %c0_98 = arith.constant 0 : index
    %452 = vector.load %arg10[%c0_97, %c0_98] : memref<1x32xf32, #tpu.memory_space<vmem>>, vector<1x32xf32>
    %453 = vector.broadcast %452 : vector<1x32xf32> to vector<2x32xf32>
    %454 = arith.addf %451, %453 : vector<2x32xf32>
    %455 = vector.extract_strided_slice %379 {offsets = [14, 0], sizes = [2, 32], strides = [1, 1]} : vector<16x32xf32> to vector<2x32xf32>
    %456 = arith.addf %455, %454 : vector<2x32xf32>
    %cst_99 = arith.constant dense<0.000000e+00> : vector<2xf32>
    %457 = vector.multi_reduction <add>, %456, %cst_99 [1] : vector<2x32xf32> to vector<2xf32>
    %458 = vector.shape_cast %457 : vector<2xf32> to vector<2x1xf32>
    %cst_100 = arith.constant 3.200000e+01 : f32
    %459 = vector.broadcast %cst_100 : f32 to vector<2x1xf32>
    %460 = arith.divf %458, %459 : vector<2x1xf32>
    %461 = vector.broadcast %460 : vector<2x1xf32> to vector<2x32xf32>
    %462 = arith.subf %456, %461 : vector<2x32xf32>
    %463 = arith.mulf %462, %462 : vector<2x32xf32>
    %cst_101 = arith.constant dense<0.000000e+00> : vector<2xf32>
    %464 = vector.multi_reduction <add>, %463, %cst_101 [1] : vector<2x32xf32> to vector<2xf32>
    %465 = vector.shape_cast %464 : vector<2xf32> to vector<2x1xf32>
    %cst_102 = arith.constant 3.200000e+01 : f32
    %466 = vector.broadcast %cst_102 : f32 to vector<2x1xf32>
    %467 = arith.divf %465, %466 : vector<2x1xf32>
    %468 = vector.broadcast %460 : vector<2x1xf32> to vector<2x32xf32>
    %469 = arith.subf %456, %468 : vector<2x32xf32>
    %cst_103 = arith.constant 9.99999974E-6 : f32
    %470 = vector.broadcast %cst_103 : f32 to vector<2x1xf32>
    %471 = arith.addf %467, %470 : vector<2x1xf32>
    %472 = math.rsqrt %471 : vector<2x1xf32>
    %473 = vector.broadcast %472 : vector<2x1xf32> to vector<2x32xf32>
    %474 = arith.mulf %469, %473 : vector<2x32xf32>
    %c0_104 = arith.constant 0 : index
    %c0_105 = arith.constant 0 : index
    %475 = vector.load %arg11[%c0_104, %c0_105] : memref<1x32xf32, #tpu.memory_space<vmem>>, vector<1x32xf32>
    %476 = vector.broadcast %475 : vector<1x32xf32> to vector<2x32xf32>
    %477 = arith.mulf %474, %476 : vector<2x32xf32>
    %c0_106 = arith.constant 0 : index
    %c0_107 = arith.constant 0 : index
    %478 = vector.load %arg12[%c0_106, %c0_107] : memref<1x32xf32, #tpu.memory_space<vmem>>, vector<1x32xf32>
    %479 = vector.broadcast %478 : vector<1x32xf32> to vector<2x32xf32>
    %480 = arith.addf %477, %479 : vector<2x32xf32>
    %481 = arith.truncf %480 : vector<2x32xf32> to vector<2x32xbf16>
    %c0_108 = arith.constant 0 : index
    %c0_109 = arith.constant 0 : index
    %482 = vector.load %arg13[%c0_108, %c0_109] : memref<32x128xbf16, #tpu.memory_space<vmem>>, vector<32x128xbf16>
    %cst_110 = arith.constant dense<0.000000e+00> : vector<2x128xf32>
    %483 = tpu.matmul %481, %482, %cst_110 {dimension_numbers = #tpu.dot_dimension_numbers<[1], [0], [0], [1], [0, 0, 1, 1], [], []>} : vector<2x32xbf16>, vector<32x128xbf16>, vector<2x128xf32> -> vector<2x128xf32>
    %c0_111 = arith.constant 0 : index
    %c0_112 = arith.constant 0 : index
    %484 = vector.load %arg14[%c0_111, %c0_112] : memref<1x128xf32, #tpu.memory_space<vmem>>, vector<1x128xf32>
    %485 = vector.broadcast %484 : vector<1x128xf32> to vector<2x128xf32>
    %486 = arith.addf %483, %485 : vector<2x128xf32>
    %c0_113 = arith.constant 0 : index
    %c0_114 = arith.constant 0 : index
    %487 = vector.load %arg17[%c0_113, %c0_114] : memref<2x128xf32, #tpu.memory_space<vmem>>, vector<2x128xf32>
    tpu.vector_store %arg17[%c0_113, %c0_114], %486 {strides = array<i32>} : memref<2x128xf32, #tpu.memory_space<vmem>>, vector<2x128xf32>,
    return
  }
}

</mosaic_0001>

<bundles_post_ra>
// kernel: _lambda_.1
= control target key start
LH: loop header
LB: loop body
LE: loop exit
PB: predicated region body
PF: predicated region fallthrough
CT: control target
= control target key end

     0   :  { %s2988_s0 = inlined_call_operand.vmem [shape: f32[8,2,4], index: 0, kind: input, shape index: {}]   ;;  %s2989_s1 = inlined_call_operand.vmem [shape: bf16[4,128], index: 1, kind: input, shape index: {}]   ;;  %s2990_s2 = inlined_call_operand.vmem [shape: bf16[32,128], index: 2, kind: input, shape index: {}]   ;;  %s2991_s3 = inlined_call_operand.vmem [shape: f32[1,128], index: 3, kind: input, shape index: {}]   ;;  %s2992_s4 = inlined_call_operand.vmem [shape: bf16[32,128], index: 4, kind: input, shape index: {}]   ;;  %s2993_s5 = inlined_call_operand.vmem [shape: bf16[32,128], index: 5, kind: input, shape index: {}]   ;;  %s2994_s6 = inlined_call_operand.vmem [shape: f32[1,128], index: 6, kind: input, shape index: {}]   ;;  %s2995_s7 = inlined_call_operand.vmem [shape: bf16[32,96], index: 7, kind: input, shape index: {}]   ;;  %s2996_s8 = inlined_call_operand.vmem [shape: f32[1,96], index: 8, kind: input, shape index: {}]   ;;  %s2997_s9 = inlined_call_operand.vmem [shape: bf16[32,32], index: 9, kind: input, shape index: {}]   ;;  %s2998_s10 = inlined_call_operand.vmem [shape: f32[1,32], index: 10, kind: input, shape index: {}]   ;;  %s2999_s11 = inlined_call_operand.vmem [shape: f32[1,32], index: 11, kind: input, shape index: {}]   ;;  %s3000_s12 = inlined_call_operand.vmem [shape: f32[1,32], index: 12, kind: input, shape index: {}]   ;;  %s3001_s13 = inlined_call_operand.vmem [shape: bf16[32,128], index: 13, kind: input, shape index: {}]   ;;  %s3002_s14 = inlined_call_operand.vmem [shape: f32[1,128], index: 14, kind: input, shape index: {}]   ;;  %s3003_s15 = inlined_call_operand.vmem [shape: bf16[32,4], index: 15, kind: input, shape index: {}]   ;;  %s3004_s16 = inlined_call_operand.vmem [shape: bf16[4,32], index: 16, kind: input, shape index: {}]   ;;  %s3005_s17 = inlined_call_operand.hbm [shape: f32[2,128], index: 17, kind: output, shape index: {}]  }
   0x1   :  { %3007 = sst [smem:[#allocation5_spill]] %s2988_s0 }
   0x2   :  { %3008 = sst [smem:[#allocation6_spill]] %s2989_s1 }
   0x3   :  { %v2514_v0 = vld [vmem:[%s2990_s2] sm:$0xff]   ;;  %v58_v1 = vlaneseq  ;;  %v2413_v2 = vmov 0.0   ;;  %vm132_vm0 = vcmask 1041408   ;;  %v2522_v3 = vld [vmem:[%s2990_s2 + $0x8] sm:$0xff]   ;;  %s3009_s0 = sld [smem:[#allocation6_spill]]  ;;  %vm2414_vm1 = vmmov 0  }
   0x4   :  { %2121 = vmatprep.subr.bf16.mxu1 %v2413_v2  ;;  %2115 = vmatprep.subr.bf16.mxu0 %v2413_v2  ;;  %s3010_s19 = sld [smem:[#allocation5_spill]]  ;;  %v2415_v15 = vmov 1983009808   ;;  %v2416_v22 = vmov 0  }
   0x5   :  { %2122 = vmatpush3.bf16.msra.mxu1 %v2514_v0  ;;  %2125 = vmatprep.mubr.msk.bf16.mxu1 %vm2414_vm1, %v2413_v2  ;;  %v91_v7 = vshrl.u32 %v58_v1, 7  ;;  %v88_v16 = vunpack.c.l.s4 %v2415_v15 }
   0x6   :  { %2123 = vmatprep.subr.bf16.mxu1 %v2413_v2  ;;  %2117 = vmatprep.mubr.msk.bf16.mxu0 %vm2414_vm1, %v2413_v2 }
   0x7   :  { %v89_v19 = vunpack.c.0.s8 %v88_v16 }
   0x9   :  { %v71_v4 = vld [vmem:[%s3009_s0] sm:$0x3]  ;;  %2124 = vmatpush3.bf16.msra.mxu1 %v2522_v3  ;;  %v92_v23 = vsub.s32 %v89_v19, %v91_v7 }
   0xa   :  { %v134_v5 = vsel %vm132_vm0, %v71_v4, 0  ;;  %v63_v6 = vld [vmem:[%s3010_s19] sm:$0x3]  ;;  %v64_v8 = vld [vmem:[%s3010_s19 + $0x2] sm:$0x3]  ;;  %2137 = vmatprep.subr.bf16.mxu1 %v2413_v2 }
   0xb   :  { %2116 = vmatpush3.bf16.msra.mxu0 %v134_v5  ;;  %v65_v9 = vld [vmem:[%s3010_s19 + $0x4] sm:$0x3]  ;;  %v66_v10 = vld [vmem:[%s3010_s19 + $0x6] sm:$0x3]  ;;  %v67_v11 = vld [vmem:[%s3010_s19 + $0x8] sm:$0x3]  ;;  %v85_v17 = vcombine.low %v63_v6, %v64_v8 }
   0xc   :  { %v68_v12 = vld [vmem:[%s3010_s19 + $0xa] sm:$0x3]  ;;  %2129 = vmatprep.subr.bf16.mxu0 %v2413_v2  ;;  %v69_v13 = vld [vmem:[%s3010_s19 + $0xc] sm:$0x3]  ;;  %v70_v14 = vld [vmem:[%s3010_s19 + $0xe] sm:$0x3]  ;;  %v86_v18 = vcombine.low %v65_v9, %v66_v10  ;;  %2126 = vmatmul.mubr.bf16.vlgmr.msra.gmra.mrb[0].mxu1 %v2416_v22 }
   0xd   :  { %v102_v20 = vcombine.low %v67_v11, %v68_v12  ;;  %v103_v21 = vcombine.low %v69_v13, %v70_v14  ;;  %2138 = vmatpush3.bf16.msra.mxu1 %v2514_v0  ;;  %2141 = vmatprep.mubr.msk.bf16.mxu1 %vm2414_vm1, %v2413_v2  ;;  %v93_v24 = vrot.slane %v85_v17, %v92_v23 }
   0xe   :  { %2139 = vmatprep.subr.bf16.mxu1 %v2413_v2  ;;  %v100_v25 = vrot.slane %v86_v18, %v92_v23 }
   0xf   :  { %v110_v26 = vrot.slane %v102_v20, %v92_v23  ;;  %v117_v27 = vrot.slane %v103_v21, %v92_v23 }
  0x10   :  { %v101_v28 = vcombine.low %v93_v24, %v100_v25 }
  0x11   :  { %v118_v29 = vcombine.low %v110_v26, %v117_v27  ;;  %2140 = vmatpush3.bf16.msra.mxu1 %v2522_v3 }
  0x12   :  { %22 = vsyncpa [#allocation3], 0  ;;  %vm128_vm2 = vcmask 31744   ;;  %2153 = vmatprep.subr.bf16.mxu1 %v2413_v2  ;;  %v59_v35 = vand.u32 127, %v58_v1  ;;  %v2006_v36 = vld [vmem:[%s2991_s3] ss:$0 sm:$0xff] }
  0x13   :  { %v121_v30 = vpack.c.bf16 %v118_v29, %v101_v28  ;;  %s2417_s3 = smov 64   ;;  %s2418_s2 = smov 32   ;;  %vm189_vm6 = vcmask 261120   ;;  %vm799_vm7 = vcmask 1043456   ;;  %vm801_vm8 = vcmask 1045504   ;;  %v2310_v44 = vld [vmem:[%s2995_s7 + $0x8] sm:$0xff]  }
  0x14   :  { %vm60_vm3 = vcmp.ge.s32.totalorder %v59_v35, 64  ;;  %vm61_vm4 = vcmp.lt.s32.totalorder %v59_v35, 96  ;;  %s2419_s20 = smov 96   ;;  %vm1881_vm9 = vcmask 261126   ;;  %s2420_s27 = smov [#allocation2]  }
  0x15   :  { %2118 = vmatmul.mubr.msk.bf16.vlgmr.msra.gmra.mrb[0].mxu0 %vm128_vm2, %v121_v30  ;;  %vm2582_vm5 = vmand %vm60_vm3, %vm61_vm4  ;;  %s1998_s28 = sshll.u32 %s2420_s27, 4  ;;  %s1999_s28 = int_to_ptr.vmem [resolvable:$true] %s1998_s28 }
  0x16   :  { %2130 = vmatpush3.bf16.msra.mxu0 %v2514_v0  ;;  %2133 = vmatprep.mubr.msk.bf16.mxu0 %vm2414_vm1, %v2413_v2  ;;  %s2389_s29 = scalar_lea.vmem %s1999_s28, 32  ;;  %p2394_p1 = scmp.lt.s32.totalorder %s1999_s28, %s1999_s28 }
  0x17   :  { %2131 = vmatprep.subr.bf16.mxu0 %v2413_v2  ;;  %p2390_p0 = scmp.ne.s32.totalorder %s1999_s28, %s2389_s29  ;;  %p2395_p2 = scmp.lt.s32.totalorder %s2389_s29, %s2389_s29 }
  0x19   :  { %p2396_p3 = por %p2395_p2, %p2394_p1 }
  0x1a   :  { %2132 = vmatpush3.bf16.msra.mxu0 %v2522_v3 }
  0x1b   :  { %2145 = vmatprep.subr.bf16.mxu0 %v2413_v2  ;;  %p2397_p4 = pnand %p2396_p3, %p2390_p0 }
  0xdf   :  { %v227_v31 = vpop.f32.mrb[0].mxu1 }
  0xe0   :  { %v2127_v32 = vpop.f32.mrb[1].mxu1 }
  0xe1   :  { %v230_v33 = vpop.f32.mrb[2].mxu1 }
  0xe2   :  { %v2128_v34 = vpop.f32.mrb[3].mxu1 }
  0xe8   :  { %v170_v37 = vpop.f32.mrb[0].mxu0 }
  0xe9   :  { %v2577_v38 = vadd.f32 %v2006_v36, %v170_v37  ;;  %v2119_v39 = vpop.f32.mrb[1].mxu0 }
  0xea   :  { %v173_v40 = vpop.f32.mrb[2].mxu0 }
  0xeb   :  { %v233_v41 = vadd.f32 %v227_v31, %v2577_v38  ;;  %v2580_v42 = vadd.f32 %v2006_v36, %v173_v40  ;;  %v2120_v43 = vpop.f32.mrb[3].mxu0 }
  0xed   :  { %v234_v45 = vmul.f32 0.5, %v233_v41 }
  0xef   :  { %v235_v46 = vsel %vm2582_vm5, %v233_v41, %v234_v45 }
  0xf0   :  { %2317 = vtanh.f32 %v235_v46 }
  0xfa   :  { %v2318_v47 = vpop.eup %2317 }
  0xfb   :  { %v237_v48 = vmul.f32 0.5, %v2318_v47 }
  0xfd   :  { %v238_v49 = vadd.f32 0.5, %v237_v48 }
  0xff   :  { %v239_v50 = vsel %vm2582_vm5, %v2318_v47, %v238_v49 }
 0x100   :  { %242 = vrot.lane.b32.xlu0 %v239_v50, %s2417_s3  ;;  %v240_v53 = vmul.f32 0.0, %v239_v50 }
 0x172   :  { %v243_v51 = vpop.permute.xlu0 %242 }
 0x173   :  { %v245_v52 = vmul.f32 %v243_v51, %v239_v50 }
 0x175   :  { %247 = vrot.lane.b32.xlu0 %v245_v52, %s2418_s2 }
 0x1e7   :  { %v248_v54 = vpop.permute.xlu0 %247 }
 0x1e8   :  { %v250_v55 = vadd.f32 %v248_v54, %v240_v53 }
 0x1ea   :  { %2319 = vtanh.f32 %v250_v55  ;;  %v315_v14 = vrot.slane %v250_v55, 6 }
 0x1f4   :  { %v2320_v56 = vpop.eup %2319 }
 0x1f5   :  { %253 = vrot.lane.b32.xlu1 %v2320_v56, %s2417_s3 }
 0x267   :  { %v254_v57 = vpop.permute.xlu1 %253 }
 0x268   :  { %v2593_v58 = vmul.f32 %v254_v57, %v239_v50 }
 0x26a   :  { %v257_v59 = vpack.c.bf16 %v2593_v58, %v2593_v58 }
 0x26c   :  { %259 = vrot.lane.b32.xlu1 %v257_v59, %s2418_s2 }
 0x2de   :  { %v260_v60 = vpop.permute.xlu1 %259 }
 0x2df   :  { %2134 = vmatmul.mubr.msk.bf16.vlgmr.msra.gmra.mrb[4].mxu0 %vm189_vm6, %v260_v60 }
 0x2e0   :  { %2146 = vmatpush3.bf16.msra.mxu0 %v2514_v0  ;;  %2149 = vmatprep.mubr.msk.bf16.mxu0 %vm2414_vm1, %v2413_v2 }
 0x2e1   :  { %2147 = vmatprep.subr.bf16.mxu0 %v2413_v2 }
 0x2e4   :  { %2148 = vmatpush3.bf16.msra.mxu0 %v2522_v3 }
 0x2e5   :  { %2161 = vmatprep.subr.bf16.mxu0 %v2413_v2 }
 0x3b2   :  { %v298_v61 = vpop.f32.mrb[4].mxu0 }
 0x3b3   :  { %v305_v62 = vrot.slane %v298_v61, 6  ;;  %v2135_v63 = vpop.f32.mrb[5].mxu0 }
 0x3b4   :  { %v301_v1 = vpop.f32.mrb[6].mxu0 }
 0x3b5   :  { %v307_v4 = vadd.f32 %v305_v62, %v2577_v38  ;;  %v2136_v5 = vpop.f32.mrb[7].mxu0 }
 0x3b7   :  { %v308_v6 = vmul.f32 0.5, %v307_v4 }
 0x3b9   :  { %v309_v7 = vsel %vm2582_vm5, %v307_v4, %v308_v6 }
 0x3ba   :  { %2321 = vtanh.f32 %v309_v7 }
 0x3c4   :  { %v2322_v8 = vpop.eup %2321 }
 0x3c5   :  { %v311_v9 = vmul.f32 0.5, %v2322_v8 }
 0x3c7   :  { %v312_v10 = vadd.f32 0.5, %v311_v9 }
 0x3c9   :  { %v313_v11 = vsel %vm2582_vm5, %v2322_v8, %v312_v10 }
 0x3ca   :  { %319 = vrot.lane.b32.xlu0 %v313_v11, %s2417_s3  ;;  %v317_v15 = vmul.f32 %v315_v14, %v313_v11 }
 0x43c   :  { %v320_v12 = vpop.permute.xlu0 %319 }
 0x43d   :  { %v322_v13 = vmul.f32 %v320_v12, %v313_v11 }
 0x43f   :  { %324 = vrot.lane.b32.xlu1 %v322_v13, %s2418_s2 }
 0x4b1   :  { %v325_v16 = vpop.permute.xlu1 %324 }
 0x4b2   :  { %v327_v17 = vadd.f32 %v325_v16, %v317_v15 }
 0x4b4   :  { %2323 = vtanh.f32 %v327_v17  ;;  %v393_v40 = vrot.slane %v327_v17, 6 }
 0x4be   :  { %v2324_v18 = vpop.eup %2323 }
 0x4bf   :  { %330 = vrot.lane.b32.xlu0 %v2324_v18, %s2417_s3 }
 0x531   :  { %v331_v19 = vpop.permute.xlu0 %330 }
 0x532   :  { %v333_v20 = vmul.f32 %v331_v19, %v313_v11 }
 0x534   :  { %v334_v21 = vpack.c.bf16 %v333_v20, %v333_v20  ;;  %v798_v49 = vsel %vm132_vm0, %v2593_v58, %v333_v20 }
 0x536   :  { %v336_v23 = vrot.slane %v334_v21, 1 }
 0x538   :  { %337 = vrot.lane.b32.xlu1 %v336_v23, %s2418_s2 }
 0x5aa   :  { %v338_v24 = vpop.permute.xlu1 %337 }
 0x5ab   :  { %2142 = vmatmul.mubr.msk.bf16.vlgmr.msra.gmra.mrb[4].mxu1 %vm189_vm6, %v338_v24 }
 0x5ac   :  { %2154 = vmatpush3.bf16.msra.mxu1 %v2514_v0  ;;  %2157 = vmatprep.mubr.msk.bf16.mxu1 %vm2414_vm1, %v2413_v2 }
 0x5ad   :  { %2155 = vmatprep.subr.bf16.mxu1 %v2413_v2 }
 0x5b0   :  { %2156 = vmatpush3.bf16.msra.mxu1 %v2522_v3 }
 0x5b1   :  { %2169 = vmatprep.subr.bf16.mxu1 %v2413_v2 }
 0x67e   :  { %v376_v25 = vpop.f32.mrb[4].mxu1 }
 0x67f   :  { %v383_v26 = vrot.slane %v376_v25, 4  ;;  %v2143_v27 = vpop.f32.mrb[5].mxu1 }
 0x680   :  { %v379_v28 = vpop.f32.mrb[6].mxu1 }
 0x681   :  { %v385_v29 = vadd.f32 %v383_v26, %v2577_v38  ;;  %v2144_v30 = vpop.f32.mrb[7].mxu1 }
 0x683   :  { %v386_v31 = vmul.f32 0.5, %v385_v29 }
 0x685   :  { %v387_v32 = vsel %vm2582_vm5, %v385_v29, %v386_v31 }
 0x686   :  { %2325 = vtanh.f32 %v387_v32 }
 0x690   :  { %v2326_v33 = vpop.eup %2325 }
 0x691   :  { %v389_v34 = vmul.f32 0.5, %v2326_v33 }
 0x693   :  { %v390_v35 = vadd.f32 0.5, %v389_v34 }
 0x695   :  { %v391_v36 = vsel %vm2582_vm5, %v2326_v33, %v390_v35 }
 0x696   :  { %397 = vrot.lane.b32.xlu0 %v391_v36, %s2417_s3  ;;  %v395_v41 = vmul.f32 %v393_v40, %v391_v36 }
 0x708   :  { %v398_v37 = vpop.permute.xlu0 %397 }
 0x709   :  { %v400_v39 = vmul.f32 %v398_v37, %v391_v36 }
 0x70b   :  { %402 = vrot.lane.b32.xlu1 %v400_v39, %s2418_s2 }
 0x77d   :  { %v403_v43 = vpop.permute.xlu1 %402 }
 0x77e   :  { %v405_v45 = vadd.f32 %v403_v43, %v395_v41 }
 0x780   :  { %2327 = vtanh.f32 %v405_v45  ;;  %v471_v7 = vrot.slane %v405_v45, 6 }
 0x78a   :  { %v2328_v46 = vpop.eup %2327 }
 0x78b   :  { %408 = vrot.lane.b32.xlu0 %v2328_v46, %s2417_s3 }
 0x7fd   :  { %v409_v47 = vpop.permute.xlu0 %408 }
 0x7fe   :  { %v411_v48 = vmul.f32 %v409_v47, %v391_v36 }
 0x800   :  { %v412_v50 = vpack.c.bf16 %v411_v48, %v411_v48  ;;  %v800_v51 = vsel %vm799_vm7, %v798_v49, %v411_v48 }
 0x802   :  { %v414_v52 = vrot.slane %v412_v50, 2 }
 0x804   :  { %415 = vrot.lane.b32.xlu1 %v414_v52, %s2418_s2 }
 0x876   :  { %v416_v53 = vpop.permute.xlu1 %415 }
 0x877   :  { %2150 = vmatmul.mubr.msk.bf16.vlgmr.msra.gmra.mrb[8].mxu0 %vm189_vm6, %v416_v53 }
 0x878   :  { %2162 = vmatpush3.bf16.msra.mxu0 %v2514_v0  ;;  %2165 = vmatprep.mubr.msk.bf16.mxu0 %vm2414_vm1, %v2413_v2 }
 0x879   :  { %2163 = vmatprep.subr.bf16.mxu0 %v2413_v2 }
 0x87c   :  { %2164 = vmatpush3.bf16.msra.mxu0 %v2522_v3 }
 0x87d   :  { %2177 = vmatprep.subr.bf16.mxu0 %v2413_v2 }
 0x94a   :  { %v454_v54 = vpop.f32.mrb[8].mxu0 }
 0x94b   :  { %v461_v55 = vrot.slane %v454_v54, 2  ;;  %v2151_v56 = vpop.f32.mrb[9].mxu0 }
 0x94c   :  { %v457_v57 = vpop.f32.mrb[10].mxu0 }
 0x94d   :  { %v463_v58 = vadd.f32 %v461_v55, %v2577_v38  ;;  %v2152_v59 = vpop.f32.mrb[11].mxu0 }
 0x94f   :  { %v464_v60 = vmul.f32 0.5, %v463_v58 }
 0x951   :  { %v465_v61 = vsel %vm2582_vm5, %v463_v58, %v464_v60 }
 0x952   :  { %2329 = vtanh.f32 %v465_v61 }
 0x95c   :  { %v2330_v62 = vpop.eup %2329 }
 0x95d   :  { %v467_v63 = vmul.f32 0.5, %v2330_v62 }
 0x95f   :  { %v468_v1 = vadd.f32 0.5, %v467_v63 }
 0x961   :  { %v469_v4 = vsel %vm2582_vm5, %v2330_v62, %v468_v1 }
 0x962   :  { %475 = vrot.lane.b32.xlu0 %v469_v4, %s2417_s3  ;;  %v473_v38 = vmul.f32 %v471_v7, %v469_v4 }
 0x9d4   :  { %v476_v5 = vpop.permute.xlu0 %475 }
 0x9d5   :  { %v478_v6 = vmul.f32 %v476_v5, %v469_v4 }
 0x9d7   :  { %480 = vrot.lane.b32.xlu1 %v478_v6, %s2418_s2 }
 0xa49   :  { %v481_v8 = vpop.permute.xlu1 %480 }
 0xa4a   :  { %v483_v9 = vadd.f32 %v481_v8, %v473_v38 }
 0xa4c   :  { %2331 = vtanh.f32 %v483_v9  ;;  %v546_v31 = vrot.slane %v483_v9, 6 }
 0xa56   :  { %v2332_v10 = vpop.eup %2331 }
 0xa57   :  { %486 = vrot.lane.b32.xlu0 %v2332_v10, %s2417_s3 }
 0xac9   :  { %v487_v11 = vpop.permute.xlu0 %486 }
 0xaca   :  { %v489_v12 = vmul.f32 %v487_v11, %v469_v4 }
 0xacc   :  { %v490_v13 = vpack.c.bf16 %v489_v12, %v489_v12  ;;  %v2649_v14 = vsel %vm801_vm8, %v800_v51, %v489_v12 }
 0xace   :  { %v492_v15 = vrot.slane %v490_v13, 3 }
 0xad0   :  { %493 = vrot.lane.b32.xlu1 %v492_v15, %s2418_s2 }
 0xb42   :  { %v494_v16 = vpop.permute.xlu1 %493 }
 0xb43   :  { %2158 = vmatmul.mubr.msk.bf16.vlgmr.msra.gmra.mrb[8].mxu1 %vm189_vm6, %v494_v16 }
 0xb44   :  { %2170 = vmatpush3.bf16.msra.mxu1 %v2514_v0  ;;  %2173 = vmatprep.mubr.msk.bf16.mxu1 %vm2414_vm1, %v2413_v2 }
 0xb45   :  { %2171 = vmatprep.subr.bf16.mxu1 %v2413_v2 }
 0xb48   :  { %2172 = vmatpush3.bf16.msra.mxu1 %v2522_v3 }
 0xb49   :  { %2185 = vmatprep.subr.bf16.mxu1 %v2413_v2 }
 0xc16   :  { %v532_v17 = vpop.f32.mrb[8].mxu1 }
 0xc17   :  { %v538_v18 = vadd.f32 %v532_v17, %v2580_v42  ;;  %v2159_v19 = vpop.f32.mrb[9].mxu1 }
 0xc18   :  { %v535_v20 = vpop.f32.mrb[10].mxu1 }
 0xc19   :  { %v539_v21 = vmul.f32 0.5, %v538_v18  ;;  %v2160_v23 = vpop.f32.mrb[11].mxu1 }
 0xc1b   :  { %v540_v24 = vsel %vm2582_vm5, %v538_v18, %v539_v21 }
 0xc1c   :  { %2333 = vtanh.f32 %v540_v24 }
 0xc26   :  { %v2334_v25 = vpop.eup %2333 }
 0xc27   :  { %v542_v26 = vmul.f32 0.5, %v2334_v25 }
 0xc29   :  { %v543_v27 = vadd.f32 0.5, %v542_v26 }
 0xc2b   :  { %v544_v28 = vsel %vm2582_vm5, %v2334_v25, %v543_v27 }
 0xc2c   :  { %550 = vrot.lane.b32.xlu0 %v544_v28, %s2417_s3  ;;  %v548_v32 = vmul.f32 %v546_v31, %v544_v28 }
 0xc9e   :  { %v551_v29 = vpop.permute.xlu0 %550 }
 0xc9f   :  { %v553_v30 = vmul.f32 %v551_v29, %v544_v28 }
 0xca1   :  { %555 = vrot.lane.b32.xlu1 %v553_v30, %s2418_s2 }
 0xd13   :  { %v556_v33 = vpop.permute.xlu1 %555 }
 0xd14   :  { %v558_v34 = vadd.f32 %v556_v33, %v548_v32 }
 0xd16   :  { %2335 = vtanh.f32 %v558_v34  ;;  %v623_v55 = vrot.slane %v558_v34, 6 }
 0xd20   :  { %v2336_v35 = vpop.eup %2335 }
 0xd21   :  { %561 = vrot.lane.b32.xlu0 %v2336_v35, %s2417_s3 }
 0xd93   :  { %v562_v36 = vpop.permute.xlu0 %561 }
 0xd94   :  { %v2667_v37 = vmul.f32 %v562_v36, %v544_v28 }
 0xd96   :  { %v565_v39 = vpack.c.bf16 %v2667_v37, %v2667_v37 }
 0xd98   :  { %567 = vrot.lane.b32.xlu1 %v565_v39, %s2418_s2 }
 0xe0a   :  { %v568_v40 = vpop.permute.xlu1 %567 }
 0xe0b   :  { %2166 = vmatmul.mubr.msk.bf16.vlgmr.msra.gmra.mrb[12].mxu0 %vm189_vm6, %v568_v40 }
 0xe0c   :  { %2178 = vmatpush3.bf16.msra.mxu0 %v2514_v0  ;;  %2181 = vmatprep.mubr.msk.bf16.mxu0 %vm2414_vm1, %v2413_v2 }
 0xe0d   :  { %2179 = vmatprep.subr.bf16.mxu0 %v2413_v2 }
 0xe10   :  { %2180 = vmatpush3.bf16.msra.mxu0 %v2522_v3 }
 0xe11   :  { %2193 = vmatprep.subr.bf16.mxu0 %v2413_v2 }
 0xede   :  { %v606_v41 = vpop.f32.mrb[12].mxu0 }
 0xedf   :  { %v613_v43 = vrot.slane %v606_v41, 6  ;;  %v2167_v45 = vpop.f32.mrb[13].mxu0 }
 0xee0   :  { %v609_v46 = vpop.f32.mrb[14].mxu0 }
 0xee1   :  { %v615_v47 = vadd.f32 %v613_v43, %v2580_v42  ;;  %v2168_v48 = vpop.f32.mrb[15].mxu0 }
 0xee3   :  { %v616_v49 = vmul.f32 0.5, %v615_v47 }
 0xee5   :  { %v617_v0 = vsel %vm2582_vm5, %v615_v47, %v616_v49 }
 0xee6   :  { %2337 = vtanh.f32 %v617_v0 }
 0xef0   :  { %v2338_v50 = vpop.eup %2337 }
 0xef1   :  { %v619_v51 = vmul.f32 0.5, %v2338_v50 }
 0xef3   :  { %v620_v52 = vadd.f32 0.5, %v619_v51  ;;  %v2719_v51 = vld [vmem:[%s2993_s5] sm:$0xff]  }
 0xef5   :  { %v621_v3 = vsel %vm2582_vm5, %v2338_v50, %v620_v52  ;;  %v2305_v50 = vld [vmem:[%s2992_s4] sm:$0xff]   ;;  %v2307_v52 = vld [vmem:[%s2992_s4 + $0x8] sm:$0xff]  }
 0xef6   :  { %627 = vrot.lane.b32.xlu0 %v621_v3, %s2417_s3  ;;  %v625_v56 = vmul.f32 %v623_v55, %v621_v3 }
 0xf68   :  { %v628_v53 = vpop.permute.xlu0 %627 }
 0xf69   :  { %v630_v54 = vmul.f32 %v628_v53, %v621_v3 }
 0xf6b   :  { %632 = vrot.lane.b32.xlu1 %v630_v54, %s2418_s2 }
 0xfdd   :  { %v633_v57 = vpop.permute.xlu1 %632 }
 0xfde   :  { %v635_v58 = vadd.f32 %v633_v57, %v625_v56 }
 0xfe0   :  { %2339 = vtanh.f32 %v635_v58  ;;  %v701_v18 = vrot.slane %v635_v58, 6 }
 0xfea   :  { %v2340_v59 = vpop.eup %2339 }
 0xfeb   :  { %638 = vrot.lane.b32.xlu0 %v2340_v59, %s2417_s3 }
0x105d   :  { %v639_v60 = vpop.permute.xlu0 %638 }
0x105e   :  { %v641_v61 = vmul.f32 %v639_v60, %v621_v3  ;;  %v2728_v3 = vld [vmem:[%s2993_s5 + $0x8] sm:$0xff]  }
0x1060   :  { %v642_v62 = vpack.c.bf16 %v641_v61, %v641_v61  ;;  %v803_v26 = vsel %vm132_vm0, %v2667_v37, %v641_v61 }
0x1062   :  { %v644_v63 = vrot.slane %v642_v62, 1 }
0x1064   :  { %645 = vrot.lane.b32.xlu1 %v644_v63, %s2418_s2 }
0x10d6   :  { %v646_v1 = vpop.permute.xlu1 %645 }
0x10d7   :  { %2174 = vmatmul.mubr.msk.bf16.vlgmr.msra.gmra.mrb[12].mxu1 %vm189_vm6, %v646_v1 }
0x10d8   :  { %2189 = vmatprep.mubr.msk.bf16.mxu1 %vm2414_vm1, %v2413_v2  ;;  %2186 = vmatpush3.bf16.msra.mxu1 %v2305_v50 }
0x10d9   :  { %2187 = vmatprep.subr.bf16.mxu1 %v2413_v2 }
0x10dc   :  { %2188 = vmatpush3.bf16.msra.mxu1 %v2307_v52 }
0x10dd   :  { %2201 = vmatprep.subr.bf16.mxu1 %v2413_v2 }
0x11aa   :  { %v684_v4 = vpop.f32.mrb[12].mxu1 }
0x11ab   :  { %v691_v5 = vrot.slane %v684_v4, 4  ;;  %v2175_v6 = vpop.f32.mrb[13].mxu1 }
0x11ac   :  { %v687_v7 = vpop.f32.mrb[14].mxu1 }
0x11ad   :  { %v693_v38 = vadd.f32 %v691_v5, %v2580_v42  ;;  %v2176_v8 = vpop.f32.mrb[15].mxu1 }
0x11af   :  { %v694_v9 = vmul.f32 0.5, %v693_v38 }
0x11b1   :  { %v695_v10 = vsel %vm2582_vm5, %v693_v38, %v694_v9 }
0x11b2   :  { %2341 = vtanh.f32 %v695_v10 }
0x11bc   :  { %v2342_v11 = vpop.eup %2341 }
0x11bd   :  { %v697_v12 = vmul.f32 0.5, %v2342_v11 }
0x11bf   :  { %v698_v13 = vadd.f32 0.5, %v697_v12 }
0x11c1   :  { %v699_v15 = vsel %vm2582_vm5, %v2342_v11, %v698_v13 }
0x11c2   :  { %705 = vrot.lane.b32.xlu0 %v699_v15, %s2417_s3  ;;  %v703_v19 = vmul.f32 %v701_v18, %v699_v15 }
0x1234   :  { %v706_v16 = vpop.permute.xlu0 %705 }
0x1235   :  { %v708_v17 = vmul.f32 %v706_v16, %v699_v15 }
0x1237   :  { %710 = vrot.lane.b32.xlu1 %v708_v17, %s2418_s2 }
0x12a9   :  { %v711_v20 = vpop.permute.xlu1 %710 }
0x12aa   :  { %v713_v21 = vadd.f32 %v711_v20, %v703_v19 }
0x12ac   :  { %2343 = vtanh.f32 %v713_v21  ;;  %v779_v48 = vrot.slane %v713_v21, 6 }
0x12b6   :  { %v2344_v23 = vpop.eup %2343 }
0x12b7   :  { %716 = vrot.lane.b32.xlu0 %v2344_v23, %s2417_s3 }
0x1329   :  { %v717_v24 = vpop.permute.xlu0 %716 }
0x132a   :  { %v719_v25 = vmul.f32 %v717_v24, %v699_v15 }
0x132c   :  { %v720_v27 = vpack.c.bf16 %v719_v25, %v719_v25  ;;  %v804_v28 = vsel %vm799_vm7, %v803_v26, %v719_v25 }
0x132e   :  { %v722_v29 = vrot.slane %v720_v27, 2 }
0x1330   :  { %723 = vrot.lane.b32.xlu1 %v722_v29, %s2418_s2 }
0x13a2   :  { %v724_v30 = vpop.permute.xlu1 %723 }
0x13a3   :  { %2182 = vmatmul.mubr.msk.bf16.vlgmr.msra.gmra.mrb[16].mxu0 %vm189_vm6, %v724_v30 }
0x13a4   :  { %2197 = vmatprep.mubr.msk.bf16.mxu0 %vm2414_vm1, %v2413_v2  ;;  %2194 = vmatpush3.bf16.msra.mxu0 %v2719_v51 }
0x13a5   :  { %2195 = vmatprep.subr.bf16.mxu0 %v2413_v2 }
0x13a8   :  { %2196 = vmatpush3.bf16.msra.mxu0 %v2728_v3 }
0x13a9   :  { %2209 = vmatprep.subr.bf16.mxu0 %v2413_v2 }
0x13ab   :  { %2198 = vmatmul.mubr.bf16.vlgmr.msra.gmra.mrb[20].mxu0 %v2416_v22 }
0x13ac   :  { %2210 = vmatpush3.bf16.msra.mxu0 %v2719_v51  ;;  %2213 = vmatprep.mubr.msk.bf16.mxu0 %vm2414_vm1, %v2413_v2 }
0x13ad   :  { %2211 = vmatprep.subr.bf16.mxu0 %v2413_v2 }
0x13b0   :  { %2212 = vmatpush3.bf16.msra.mxu0 %v2728_v3 }
0x13b1   :  { %2225 = vmatprep.subr.bf16.mxu0 %v2413_v2 }
0x1476   :  { %v762_v31 = vpop.f32.mrb[16].mxu0 }
0x1477   :  { %v769_v32 = vrot.slane %v762_v31, 2  ;;  %v2183_v33 = vpop.f32.mrb[17].mxu0 }
0x1478   :  { %v765_v34 = vpop.f32.mrb[18].mxu0 }
0x1479   :  { %v771_v35 = vadd.f32 %v769_v32, %v2580_v42  ;;  %v2184_v36 = vpop.f32.mrb[19].mxu0 }
0x147b   :  { %v772_v37 = vmul.f32 0.5, %v771_v35 }
0x147d   :  { %v773_v39 = vsel %vm2582_vm5, %v771_v35, %v772_v37 }
0x147e   :  { %2345 = vtanh.f32 %v773_v39  ;;  %v927_v22 = vpop.f32.mrb[20].mxu0 }
0x147f   :  { %v2199_v58 = vpop.f32.mrb[21].mxu0 }
0x1480   :  { %v930_v59 = vpop.f32.mrb[22].mxu0 }
0x1481   :  { %v2200_v60 = vpop.f32.mrb[23].mxu0 }
0x1488   :  { %v2346_v40 = vpop.eup %2345 }
0x1489   :  { %v775_v41 = vmul.f32 0.5, %v2346_v40 }
0x148b   :  { %v776_v43 = vadd.f32 0.5, %v775_v41 }
0x148d   :  { %v777_v45 = vsel %vm2582_vm5, %v2346_v40, %v776_v43 }
0x148e   :  { %783 = vrot.lane.b32.xlu0 %v777_v45, %s2417_s3  ;;  %v781_v42 = vmul.f32 %v779_v48, %v777_v45 }
0x1500   :  { %v784_v46 = vpop.permute.xlu0 %783 }
0x1501   :  { %v786_v47 = vmul.f32 %v784_v46, %v777_v45 }
0x1503   :  { %788 = vrot.lane.b32.xlu1 %v786_v47, %s2418_s2 }
0x1575   :  { %v789_v49 = vpop.permute.xlu1 %788 }
0x1576   :  { %v791_v0 = vadd.f32 %v789_v49, %v781_v42 }
0x1578   :  { %2347 = vtanh.f32 %v791_v0 }
0x1582   :  { %v2348_v53 = vpop.eup %2347 }
0x1583   :  { %794 = vrot.lane.b32.xlu0 %v2348_v53, %s2417_s3 }
0x15f5   :  { %v795_v54 = vpop.permute.xlu0 %794 }
0x15f6   :  { %v797_v55 = vmul.f32 %v795_v54, %v777_v45 }
0x15f8   :  { %v805_v56 = vsel %vm801_vm8, %v804_v28, %v797_v55 }
0x15f9   :  { %v815_v57 = vpack.c.bf16 %v805_v56, %v2649_v14  ;;  %v2017_v14 = vld [vmem:[%s2994_s6] ss:$0 sm:$0xff] }
0x15fb   :  { %823 = vrot.lane.b32.xlu1 %v815_v57, %s2418_s2 }
0x166d   :  { %v824_v61 = vpop.permute.xlu1 %823 }
0x166e   :  { %2190 = vmatmul.mubr.msk.bf16.vlgmr.msra.gmra.mrb[16].mxu1 %vm189_vm6, %v824_v61 }
0x166f   :  { %2202 = vmatpush3.bf16.msra.mxu1 %v2719_v51  ;;  %2205 = vmatprep.mubr.msk.bf16.mxu1 %vm2414_vm1, %v2413_v2 }
0x1670   :  { %2203 = vmatprep.subr.bf16.mxu1 %v2413_v2 }
0x1673   :  { %2204 = vmatpush3.bf16.msra.mxu1 %v2728_v3 }
0x1674   :  { %2217 = vmatprep.subr.bf16.mxu1 %v2413_v2 }
0x1741   :  { %v874_v62 = vpop.f32.mrb[16].mxu1 }
0x1742   :  { %v2756_v63 = vadd.f32 %v2017_v14, %v874_v62  ;;  %v2191_v1 = vpop.f32.mrb[17].mxu1 }
0x1743   :  { %v877_v4 = vpop.f32.mrb[18].mxu1 }
0x1744   :  { %v933_v5 = vadd.f32 %v927_v22, %v2756_v63  ;;  %v2759_v6 = vadd.f32 %v2017_v14, %v877_v4  ;;  %v2192_v7 = vpop.f32.mrb[19].mxu1 }
0x1746   :  { %v934_v38 = vmul.f32 0.5, %v933_v5 }
0x1748   :  { %v935_v8 = vsel %vm2582_vm5, %v933_v5, %v934_v38 }
0x1749   :  { %2349 = vtanh.f32 %v935_v8 }
0x1753   :  { %v2350_v9 = vpop.eup %2349 }
0x1754   :  { %v937_v10 = vmul.f32 0.5, %v2350_v9 }
0x1756   :  { %v938_v11 = vadd.f32 0.5, %v937_v10 }
0x1758   :  { %v939_v12 = vsel %vm2582_vm5, %v2350_v9, %v938_v11 }
0x1759   :  { %942 = vrot.lane.b32.xlu0 %v939_v12, %s2417_s3  ;;  %v940_v16 = vmul.f32 0.0, %v939_v12 }
0x17cb   :  { %v943_v13 = vpop.permute.xlu0 %942 }
0x17cc   :  { %v945_v15 = vmul.f32 %v943_v13, %v939_v12 }
0x17ce   :  { %947 = vrot.lane.b32.xlu1 %v945_v15, %s2418_s2 }
0x1840   :  { %v948_v17 = vpop.permute.xlu1 %947 }
0x1841   :  { %v950_v18 = vadd.f32 %v948_v17, %v940_v16 }
0x1843   :  { %2351 = vtanh.f32 %v950_v18  ;;  %v1015_v40 = vrot.slane %v950_v18, 6 }
0x184d   :  { %v2352_v19 = vpop.eup %2351 }
0x184e   :  { %953 = vrot.lane.b32.xlu0 %v2352_v19, %s2417_s3 }
0x18c0   :  { %v954_v20 = vpop.permute.xlu0 %953 }
0x18c1   :  { %v2768_v21 = vmul.f32 %v954_v20, %v939_v12 }
0x18c3   :  { %v957_v23 = vpack.c.bf16 %v2768_v21, %v2768_v21 }
0x18c5   :  { %959 = vrot.lane.b32.xlu1 %v957_v23, %s2418_s2 }
0x1937   :  { %v960_v24 = vpop.permute.xlu1 %959 }
0x1938   :  { %2206 = vmatmul.mubr.msk.bf16.vlgmr.msra.gmra.mrb[20].mxu1 %vm189_vm6, %v960_v24 }
0x1939   :  { %2218 = vmatpush3.bf16.msra.mxu1 %v2719_v51  ;;  %2221 = vmatprep.mubr.msk.bf16.mxu1 %vm2414_vm1, %v2413_v2 }
0x193a   :  { %2219 = vmatprep.subr.bf16.mxu1 %v2413_v2 }
0x193d   :  { %2220 = vmatpush3.bf16.msra.mxu1 %v2728_v3 }
0x193e   :  { %2233 = vmatprep.subr.bf16.mxu1 %v2413_v2 }
0x1a0b   :  { %v998_v25 = vpop.f32.mrb[20].mxu1 }
0x1a0c   :  { %v1005_v26 = vrot.slane %v998_v25, 6  ;;  %v2207_v27 = vpop.f32.mrb[21].mxu1 }
0x1a0d   :  { %v1001_v28 = vpop.f32.mrb[22].mxu1 }
0x1a0e   :  { %v1007_v29 = vadd.f32 %v1005_v26, %v2756_v63  ;;  %v2208_v30 = vpop.f32.mrb[23].mxu1 }
0x1a10   :  { %v1008_v31 = vmul.f32 0.5, %v1007_v29 }
0x1a12   :  { %v1009_v32 = vsel %vm2582_vm5, %v1007_v29, %v1008_v31 }
0x1a13   :  { %2353 = vtanh.f32 %v1009_v32 }
0x1a1d   :  { %v2354_v33 = vpop.eup %2353 }
0x1a1e   :  { %v1011_v34 = vmul.f32 0.5, %v2354_v33 }
0x1a20   :  { %v1012_v35 = vadd.f32 0.5, %v1011_v34 }
0x1a22   :  { %v1013_v36 = vsel %vm2582_vm5, %v2354_v33, %v1012_v35 }
0x1a23   :  { %1019 = vrot.lane.b32.xlu0 %v1013_v36, %s2417_s3  ;;  %v1017_v41 = vmul.f32 %v1015_v40, %v1013_v36 }
0x1a95   :  { %v1020_v37 = vpop.permute.xlu0 %1019 }
0x1a96   :  { %v1022_v39 = vmul.f32 %v1020_v37, %v1013_v36 }
0x1a98   :  { %1024 = vrot.lane.b32.xlu1 %v1022_v39, %s2418_s2 }
0x1b0a   :  { %v1025_v43 = vpop.permute.xlu1 %1024 }
0x1b0b   :  { %v1027_v45 = vadd.f32 %v1025_v43, %v1017_v41 }
0x1b0d   :  { %2355 = vtanh.f32 %v1027_v45  ;;  %v1093_v1 = vrot.slane %v1027_v45, 6 }
0x1b17   :  { %v2356_v46 = vpop.eup %2355 }
0x1b18   :  { %1030 = vrot.lane.b32.xlu0 %v2356_v46, %s2417_s3 }
0x1b8a   :  { %v1031_v47 = vpop.permute.xlu0 %1030 }
0x1b8b   :  { %v1033_v48 = vmul.f32 %v1031_v47, %v1013_v36 }
0x1b8d   :  { %v1034_v42 = vpack.c.bf16 %v1033_v48, %v1033_v48  ;;  %v1498_v10 = vsel %vm132_vm0, %v2768_v21, %v1033_v48 }
0x1b8f   :  { %v1036_v49 = vrot.slane %v1034_v42, 1 }
0x1b91   :  { %1037 = vrot.lane.b32.xlu1 %v1036_v49, %s2418_s2 }
0x1c03   :  { %v1038_v0 = vpop.permute.xlu1 %1037 }
0x1c04   :  { %2214 = vmatmul.mubr.msk.bf16.vlgmr.msra.gmra.mrb[24].mxu0 %vm189_vm6, %v1038_v0 }
0x1c05   :  { %2226 = vmatpush3.bf16.msra.mxu0 %v2719_v51  ;;  %2229 = vmatprep.mubr.msk.bf16.mxu0 %vm2414_vm1, %v2413_v2 }
0x1c06   :  { %2227 = vmatprep.subr.bf16.mxu0 %v2413_v2 }
0x1c09   :  { %2228 = vmatpush3.bf16.msra.mxu0 %v2728_v3 }
0x1c0a   :  { %2241 = vmatprep.subr.bf16.mxu0 %v2413_v2 }
0x1cd7   :  { %v1076_v50 = vpop.f32.mrb[24].mxu0 }
0x1cd8   :  { %v1083_v52 = vrot.slane %v1076_v50, 4  ;;  %v2215_v53 = vpop.f32.mrb[25].mxu0 }
0x1cd9   :  { %v1079_v54 = vpop.f32.mrb[26].mxu0 }
0x1cda   :  { %v1085_v55 = vadd.f32 %v1083_v52, %v2756_v63  ;;  %v2216_v56 = vpop.f32.mrb[27].mxu0 }
0x1cdc   :  { %v1086_v57 = vmul.f32 0.5, %v1085_v55 }
0x1cde   :  { %v1087_v22 = vsel %vm2582_vm5, %v1085_v55, %v1086_v57 }
0x1cdf   :  { %2357 = vtanh.f32 %v1087_v22 }
0x1ce9   :  { %v2358_v58 = vpop.eup %2357 }
0x1cea   :  { %v1089_v59 = vmul.f32 0.5, %v2358_v58 }
0x1cec   :  { %v1090_v60 = vadd.f32 0.5, %v1089_v59 }
0x1cee   :  { %v1091_v61 = vsel %vm2582_vm5, %v2358_v58, %v1090_v60 }
0x1cef   :  { %1097 = vrot.lane.b32.xlu0 %v1091_v61, %s2417_s3  ;;  %v1095_v4 = vmul.f32 %v1093_v1, %v1091_v61 }
0x1d61   :  { %v1098_v14 = vpop.permute.xlu0 %1097 }
0x1d62   :  { %v1100_v62 = vmul.f32 %v1098_v14, %v1091_v61 }
0x1d64   :  { %1102 = vrot.lane.b32.xlu1 %v1100_v62, %s2418_s2 }
0x1dd6   :  { %v1103_v5 = vpop.permute.xlu1 %1102 }
0x1dd7   :  { %v1105_v7 = vadd.f32 %v1103_v5, %v1095_v4 }
0x1dd9   :  { %2359 = vtanh.f32 %v1105_v7  ;;  %v1171_v31 = vrot.slane %v1105_v7, 6 }
0x1de3   :  { %v2360_v38 = vpop.eup %2359 }
0x1de4   :  { %1108 = vrot.lane.b32.xlu0 %v2360_v38, %s2417_s3 }
0x1e56   :  { %v1109_v8 = vpop.permute.xlu0 %1108 }
0x1e57   :  { %v1111_v9 = vmul.f32 %v1109_v8, %v1091_v61 }
0x1e59   :  { %v1112_v11 = vpack.c.bf16 %v1111_v9, %v1111_v9  ;;  %v1499_v12 = vsel %vm799_vm7, %v1498_v10, %v1111_v9 }
0x1e5b   :  { %v1114_v13 = vrot.slane %v1112_v11, 2 }
0x1e5d   :  { %1115 = vrot.lane.b32.xlu1 %v1114_v13, %s2418_s2 }
0x1ecf   :  { %v1116_v15 = vpop.permute.xlu1 %1115 }
0x1ed0   :  { %2222 = vmatmul.mubr.msk.bf16.vlgmr.msra.gmra.mrb[24].mxu1 %vm189_vm6, %v1116_v15 }
0x1ed1   :  { %2234 = vmatpush3.bf16.msra.mxu1 %v2719_v51  ;;  %2237 = vmatprep.mubr.msk.bf16.mxu1 %vm2414_vm1, %v2413_v2 }
0x1ed2   :  { %2235 = vmatprep.subr.bf16.mxu1 %v2413_v2 }
0x1ed5   :  { %2236 = vmatpush3.bf16.msra.mxu1 %v2728_v3 }
0x1ed6   :  { %2249 = vmatprep.subr.bf16.mxu1 %v2413_v2 }
0x1fa3   :  { %v1154_v16 = vpop.f32.mrb[24].mxu1 }
0x1fa4   :  { %v1161_v17 = vrot.slane %v1154_v16, 2  ;;  %v2223_v18 = vpop.f32.mrb[25].mxu1 }
0x1fa5   :  { %v1157_v19 = vpop.f32.mrb[26].mxu1 }
0x1fa6   :  { %v1163_v20 = vadd.f32 %v1161_v17, %v2756_v63  ;;  %v2224_v21 = vpop.f32.mrb[27].mxu1 }
0x1fa8   :  { %v1164_v23 = vmul.f32 0.5, %v1163_v20 }
0x1faa   :  { %v1165_v24 = vsel %vm2582_vm5, %v1163_v20, %v1164_v23 }
0x1fab   :  { %2361 = vtanh.f32 %v1165_v24 }
0x1fb5   :  { %v2362_v25 = vpop.eup %2361 }
0x1fb6   :  { %v1167_v26 = vmul.f32 0.5, %v2362_v25 }
0x1fb8   :  { %v1168_v27 = vadd.f32 0.5, %v1167_v26 }
0x1fba   :  { %v1169_v28 = vsel %vm2582_vm5, %v2362_v25, %v1168_v27 }
0x1fbb   :  { %1175 = vrot.lane.b32.xlu0 %v1169_v28, %s2417_s3  ;;  %v1173_v63 = vmul.f32 %v1171_v31, %v1169_v28 }
0x202d   :  { %v1176_v29 = vpop.permute.xlu0 %1175 }
0x202e   :  { %v1178_v30 = vmul.f32 %v1176_v29, %v1169_v28 }
0x2030   :  { %1180 = vrot.lane.b32.xlu1 %v1178_v30, %s2418_s2 }
0x20a2   :  { %v1181_v32 = vpop.permute.xlu1 %1180 }
0x20a3   :  { %v1183_v33 = vadd.f32 %v1181_v32, %v1173_v63 }
0x20a5   :  { %2363 = vtanh.f32 %v1183_v33  ;;  %v1246_v56 = vrot.slane %v1183_v33, 6 }
0x20af   :  { %v2364_v34 = vpop.eup %2363 }
0x20b0   :  { %1186 = vrot.lane.b32.xlu0 %v2364_v34, %s2417_s3 }
0x2122   :  { %v1187_v35 = vpop.permute.xlu0 %1186 }
0x2123   :  { %v1189_v36 = vmul.f32 %v1187_v35, %v1169_v28 }
0x2125   :  { %v1190_v37 = vpack.c.bf16 %v1189_v36, %v1189_v36  ;;  %v2824_v39 = vsel %vm801_vm8, %v1499_v12, %v1189_v36 }
0x2127   :  { %v1192_v40 = vrot.slane %v1190_v37, 3 }
0x2129   :  { %1193 = vrot.lane.b32.xlu1 %v1192_v40, %s2418_s2 }
0x219b   :  { %v1194_v41 = vpop.permute.xlu1 %1193 }
0x219c   :  { %2230 = vmatmul.mubr.msk.bf16.vlgmr.msra.gmra.mrb[28].mxu0 %vm189_vm6, %v1194_v41 }
0x219d   :  { %2242 = vmatpush3.bf16.msra.mxu0 %v2719_v51  ;;  %2245 = vmatprep.mubr.msk.bf16.mxu0 %vm2414_vm1, %v2413_v2 }
0x219e   :  { %2243 = vmatprep.subr.bf16.mxu0 %v2413_v2 }
0x21a1   :  { %2244 = vmatpush3.bf16.msra.mxu0 %v2728_v3 }
0x21a2   :  { %2257 = vmatprep.subr.bf16.mxu0 %v2413_v2 }
0x226f   :  { %v1232_v43 = vpop.f32.mrb[28].mxu0 }
0x2270   :  { %v1238_v45 = vadd.f32 %v1232_v43, %v2759_v6  ;;  %v2231_v46 = vpop.f32.mrb[29].mxu0 }
0x2271   :  { %v1235_v47 = vpop.f32.mrb[30].mxu0 }
0x2272   :  { %v1239_v48 = vmul.f32 0.5, %v1238_v45  ;;  %v2232_v42 = vpop.f32.mrb[31].mxu0 }
0x2274   :  { %v1240_v49 = vsel %vm2582_vm5, %v1238_v45, %v1239_v48 }
0x2275   :  { %2365 = vtanh.f32 %v1240_v49 }
0x227f   :  { %v2366_v0 = vpop.eup %2365 }
0x2280   :  { %v1242_v50 = vmul.f32 0.5, %v2366_v0 }
0x2282   :  { %v1243_v52 = vadd.f32 0.5, %v1242_v50 }
0x2284   :  { %v1244_v53 = vsel %vm2582_vm5, %v2366_v0, %v1243_v52 }
0x2285   :  { %1250 = vrot.lane.b32.xlu0 %v1244_v53, %s2417_s3  ;;  %v1248_v57 = vmul.f32 %v1246_v56, %v1244_v53 }
0x22f7   :  { %v1251_v54 = vpop.permute.xlu0 %1250 }
0x22f8   :  { %v1253_v55 = vmul.f32 %v1251_v54, %v1244_v53 }
0x22fa   :  { %1255 = vrot.lane.b32.xlu1 %v1253_v55, %s2418_s2 }
0x236c   :  { %v1256_v22 = vpop.permute.xlu1 %1255 }
0x236d   :  { %v1258_v58 = vadd.f32 %v1256_v22, %v1248_v57 }
0x236f   :  { %2367 = vtanh.f32 %v1258_v58  ;;  %v1323_v16 = vrot.slane %v1258_v58, 6 }
0x2379   :  { %v2368_v59 = vpop.eup %2367 }
0x237a   :  { %1261 = vrot.lane.b32.xlu0 %v2368_v59, %s2417_s3 }
0x23ec   :  { %v1262_v60 = vpop.permute.xlu0 %1261 }
0x23ed   :  { %v2842_v61 = vmul.f32 %v1262_v60, %v1244_v53 }
0x23ef   :  { %v1265_v14 = vpack.c.bf16 %v2842_v61, %v2842_v61 }
0x23f1   :  { %1267 = vrot.lane.b32.xlu1 %v1265_v14, %s2418_s2 }
0x2463   :  { %v1268_v62 = vpop.permute.xlu1 %1267 }
0x2464   :  { %2238 = vmatmul.mubr.msk.bf16.vlgmr.msra.gmra.mrb[28].mxu1 %vm189_vm6, %v1268_v62 }
0x2465   :  { %2250 = vmatpush3.bf16.msra.mxu1 %v2719_v51  ;;  %2253 = vmatprep.mubr.msk.bf16.mxu1 %vm2414_vm1, %v2413_v2 }
0x2466   :  { %2251 = vmatprep.subr.bf16.mxu1 %v2413_v2 }
0x2469   :  { %2252 = vmatpush3.bf16.msra.mxu1 %v2728_v3 }
0x246a   :  { %2265 = vmatprep.subr.bf16.mxu1 %v2413_v2 }
0x2537   :  { %v1306_v1 = vpop.f32.mrb[28].mxu1 }
0x2538   :  { %v1313_v4 = vrot.slane %v1306_v1, 6  ;;  %v2239_v5 = vpop.f32.mrb[29].mxu1 }
0x2539   :  { %v1309_v7 = vpop.f32.mrb[30].mxu1 }
0x253a   :  { %v1315_v38 = vadd.f32 %v1313_v4, %v2759_v6  ;;  %v2240_v8 = vpop.f32.mrb[31].mxu1 }
0x253c   :  { %v1316_v9 = vmul.f32 0.5, %v1315_v38 }
0x253e   :  { %v1317_v51 = vsel %vm2582_vm5, %v1315_v38, %v1316_v9 }
0x253f   :  { %2369 = vtanh.f32 %v1317_v51  ;;  %v2309_v51 = vld [vmem:[%s2995_s7] sm:$0xff]  }
0x2549   :  { %v2370_v10 = vpop.eup %2369 }
0x254a   :  { %v1319_v11 = vmul.f32 0.5, %v2370_v10 }
0x254c   :  { %v1320_v12 = vadd.f32 0.5, %v1319_v11 }
0x254e   :  { %v1321_v3 = vsel %vm2582_vm5, %v2370_v10, %v1320_v12 }
0x254f   :  { %1327 = vrot.lane.b32.xlu0 %v1321_v3, %s2417_s3  ;;  %v1325_v17 = vmul.f32 %v1323_v16, %v1321_v3  ;;  %v2311_v16 = vld [vmem:[%s3003_s15] sm:$0xff]  }
0x25c1   :  { %v1328_v13 = vpop.permute.xlu0 %1327 }
0x25c2   :  { %v1330_v15 = vmul.f32 %v1328_v13, %v1321_v3 }
0x25c4   :  { %1332 = vrot.lane.b32.xlu1 %v1330_v15, %s2418_s2 }
0x2636   :  { %v1333_v18 = vpop.permute.xlu1 %1332 }
0x2637   :  { %v1335_v19 = vadd.f32 %v1333_v18, %v1325_v17  ;;  %v2312_v17 = vld [vmem:[%s3003_s15 + $0x8] sm:$0xff]  }
0x2639   :  { %2371 = vtanh.f32 %v1335_v19  ;;  %v1401_v43 = vrot.slane %v1335_v19, 6 }
0x2643   :  { %v2372_v20 = vpop.eup %2371 }
0x2644   :  { %1338 = vrot.lane.b32.xlu0 %v2372_v20, %s2417_s3 }
0x26b6   :  { %v1339_v21 = vpop.permute.xlu0 %1338 }
0x26b7   :  { %v1341_v23 = vmul.f32 %v1339_v21, %v1321_v3 }
0x26b9   :  { %v1342_v24 = vpack.c.bf16 %v1341_v23, %v1341_v23  ;;  %v1501_v0 = vsel %vm132_vm0, %v2842_v61, %v1341_v23 }
0x26bb   :  { %v1344_v25 = vrot.slane %v1342_v24, 1 }
0x26bd   :  { %1345 = vrot.lane.b32.xlu1 %v1344_v25, %s2418_s2 }
0x272f   :  { %v1346_v26 = vpop.permute.xlu1 %1345 }
0x2730   :  { %2246 = vmatmul.mubr.msk.bf16.vlgmr.msra.gmra.mrb[32].mxu0 %vm189_vm6, %v1346_v26 }
0x2731   :  { %2261 = vmatprep.mubr.msk.bf16.mxu0 %vm2414_vm1, %v2413_v2  ;;  %2258 = vmatpush3.bf16.msra.mxu0 %v2309_v51 }
0x2732   :  { %2259 = vmatprep.subr.bf16.mxu0 %v2413_v2 }
0x2735   :  { %2260 = vmatpush3.bf16.msra.mxu0 %v2310_v44 }
0x2736   :  { %2273 = vmatprep.subr.bf16.mxu0 %v2413_v2 }
0x2803   :  { %v1384_v27 = vpop.f32.mrb[32].mxu0 }
0x2804   :  { %v1391_v28 = vrot.slane %v1384_v27, 4  ;;  %v2247_v29 = vpop.f32.mrb[33].mxu0 }
0x2805   :  { %v1387_v30 = vpop.f32.mrb[34].mxu0 }
0x2806   :  { %v1393_v31 = vadd.f32 %v1391_v28, %v2759_v6  ;;  %v2248_v63 = vpop.f32.mrb[35].mxu0 }
0x2808   :  { %v1394_v32 = vmul.f32 0.5, %v1393_v31 }
0x280a   :  { %v1395_v33 = vsel %vm2582_vm5, %v1393_v31, %v1394_v32 }
0x280b   :  { %2373 = vtanh.f32 %v1395_v33 }
0x2815   :  { %v2374_v34 = vpop.eup %2373 }
0x2816   :  { %v1397_v35 = vmul.f32 0.5, %v2374_v34 }
0x2818   :  { %v1398_v36 = vadd.f32 0.5, %v1397_v35  ;;  %v1727_v35 = vld [vmem:[%s3004_s16] sm:$0x3] }
0x281a   :  { %v1399_v37 = vsel %vm2582_vm5, %v2374_v34, %v1398_v36  ;;  %v1732_v36 = vsel %vm132_vm0, %v1727_v35, 0 }
0x281b   :  { %1405 = vrot.lane.b32.xlu0 %v1399_v37, %s2417_s3  ;;  %v1403_v45 = vmul.f32 %v1401_v43, %v1399_v37 }
0x288d   :  { %v1406_v40 = vpop.permute.xlu0 %1405 }
0x288e   :  { %v1408_v41 = vmul.f32 %v1406_v40, %v1399_v37 }
0x2890   :  { %1410 = vrot.lane.b32.xlu1 %v1408_v41, %s2418_s2 }
0x2902   :  { %v1411_v46 = vpop.permute.xlu1 %1410 }
0x2903   :  { %v1413_v47 = vadd.f32 %v1411_v46, %v1403_v45 }
0x2905   :  { %2375 = vtanh.f32 %v1413_v47  ;;  %v1479_v38 = vrot.slane %v1413_v47, 6 }
0x290f   :  { %v2376_v48 = vpop.eup %2375 }
0x2910   :  { %1416 = vrot.lane.b32.xlu0 %v2376_v48, %s2417_s3 }
0x2982   :  { %v1417_v42 = vpop.permute.xlu0 %1416 }
0x2983   :  { %v1419_v49 = vmul.f32 %v1417_v42, %v1399_v37 }
0x2985   :  { %v1420_v50 = vpack.c.bf16 %v1419_v49, %v1419_v49  ;;  %v1502_v52 = vsel %vm799_vm7, %v1501_v0, %v1419_v49 }
0x2987   :  { %v1422_v53 = vrot.slane %v1420_v50, 2 }
0x2989   :  { %1423 = vrot.lane.b32.xlu1 %v1422_v53, %s2418_s2 }
0x29fb   :  { %v1424_v54 = vpop.permute.xlu1 %1423 }
0x29fc   :  { %2254 = vmatmul.mubr.msk.bf16.vlgmr.msra.gmra.mrb[32].mxu1 %vm189_vm6, %v1424_v54 }
0x29fd   :  { %2269 = vmatprep.mubr.msk.bf16.mxu1 %vm2414_vm1, %v2413_v2  ;;  %2266 = vmatpush3.bf16.msra.mxu1 %v2311_v16 }
0x29fe   :  { %2267 = vmatprep.subr.bf16.mxu1 %v2413_v2 }
0x2a01   :  { %2268 = vmatpush3.bf16.msra.mxu1 %v2312_v17 }
0x2a02   :  { %2279 = vmatprep.subr.bf16.mxu1 %v2413_v2 }
0x2acf   :  { %v1462_v55 = vpop.f32.mrb[32].mxu1 }
0x2ad0   :  { %v1469_v56 = vrot.slane %v1462_v55, 2  ;;  %v2255_v57 = vpop.f32.mrb[33].mxu1 }
0x2ad1   :  { %v1465_v22 = vpop.f32.mrb[34].mxu1 }
0x2ad2   :  { %v1471_v58 = vadd.f32 %v1469_v56, %v2759_v6  ;;  %v2256_v59 = vpop.f32.mrb[35].mxu1 }
0x2ad4   :  { %v1472_v60 = vmul.f32 0.5, %v1471_v58 }
0x2ad6   :  { %v1473_v61 = vsel %vm2582_vm5, %v1471_v58, %v1472_v60 }
0x2ad7   :  { %2377 = vtanh.f32 %v1473_v61 }
0x2ae1   :  { %v2378_v14 = vpop.eup %2377 }
0x2ae2   :  { %v1475_v62 = vmul.f32 0.5, %v2378_v14 }
0x2ae4   :  { %v1476_v1 = vadd.f32 0.5, %v1475_v62 }
0x2ae6   :  { %v1477_v4 = vsel %vm2582_vm5, %v2378_v14, %v1476_v1 }
0x2ae7   :  { %1483 = vrot.lane.b32.xlu0 %v1477_v4, %s2417_s3  ;;  %v1481_v6 = vmul.f32 %v1479_v38, %v1477_v4 }
0x2b59   :  { %v1484_v5 = vpop.permute.xlu0 %1483 }
0x2b5a   :  { %v1486_v7 = vmul.f32 %v1484_v5, %v1477_v4 }
0x2b5c   :  { %1488 = vrot.lane.b32.xlu1 %v1486_v7, %s2418_s2 }
0x2bce   :  { %v1489_v8 = vpop.permute.xlu1 %1488 }
0x2bcf   :  { %v1491_v9 = vadd.f32 %v1489_v8, %v1481_v6 }
0x2bd1   :  { %2379 = vtanh.f32 %v1491_v9 }
0x2bdb   :  { %v2380_v10 = vpop.eup %2379 }
0x2bdc   :  { %1494 = vrot.lane.b32.xlu0 %v2380_v10, %s2417_s3 }
0x2c4e   :  { %v1495_v11 = vpop.permute.xlu0 %1494 }
0x2c4f   :  { %v1497_v12 = vmul.f32 %v1495_v11, %v1477_v4 }
0x2c51   :  { %v2898_v3 = vsel %vm801_vm8, %v1502_v52, %v1497_v12 }
0x2c52   :  { %v1504_v13 = vpack.c.bf16 %v2898_v3, %v2824_v39  ;;  %v2030_v39 = vld [vmem:[%s2996_s8] ss:$0 sm:$0xff] }
0x2c54   :  { %1517 = vrot.lane.b32.xlu1 %v1504_v13, %s2418_s2 }
0x2cc6   :  { %v1518_v15 = vpop.permute.xlu1 %1517 }
0x2cc7   :  { %2262 = vmatmul.mubr.msk.bf16.vlgmr.msra.gmra.mrb[36].mxu0 %vm189_vm6, %v1518_v15 }
0x2cc8   :  { %2275 = vmatprep.mubr.msk.bf16.mxu0 %vm2414_vm1, %v2413_v2  ;;  %2274 = vmatpush3.bf16.msra.mxu0 %v1732_v36 }
0x2cc9   :  { %2287 = vmatprep.subr.bf16.mxu0 %v2413_v2 }
0x2d9a   :  { %v1568_v18 = vpop.f32.mrb[36].mxu0 }
0x2d9b   :  { %v1569_v19 = vadd.f32 %v2030_v39, %v1568_v18  ;;  %v2263_v20 = vpop.f32.mrb[37].mxu0 }
0x2d9c   :  { %v1571_v21 = vpop.f32.mrb[38].mxu0 }
0x2d9d   :  { %v1572_v23 = vadd.f32 %v2030_v39, %v1571_v21  ;;  %1586 = vrot.lane.b32.xlu0 %v1569_v19, %s2419_s20  ;;  %v2264_v24 = vpop.f32.mrb[39].mxu0 }
0x2d9f   :  { %1588 = vrot.lane.b32.xlu1 %v1572_v23, %s2419_s20  ;;  %v1576_v25 = vrot.slane %v1572_v23, 6  ;;  %v1578_v26 = vrot.slane %v1572_v23, 4  ;;  %v1580_v27 = vrot.slane %v1572_v23, 2 }
0x2da1   :  { %1775 = vrot.lane.b32.xlu0 %v1569_v19, %s2417_s3  ;;  %v1582_v28 = vsel %vm132_vm0, %v1576_v25, %v1578_v26 }
0x2da2   :  { %v1583_v29 = vsel %vm799_vm7, %v1582_v28, %v1580_v27  ;;  %v2313_v28 = vld [vmem:[%s2997_s9] sm:$0xff]  }
0x2da3   :  { %1777 = vrot.lane.b32.xlu1 %v1572_v23, %s2417_s3  ;;  %v1584_v31 = vsel %vm801_vm8, %v1583_v29, %v1572_v23  ;;  %v2314_v29 = vld [vmem:[%s2997_s9 + $0x8] sm:$0xff]  }
0x2e0f   :  { %v1587_v30 = vpop.permute.xlu0 %1586 }
0x2e10   :  { %v1592_v32 = vmul.f32 %v1587_v30, %v1584_v31 }
0x2e11   :  { %v1589_v63 = vpop.permute.xlu1 %1588 }
0x2e12   :  { %v1593_v33 = vmul.f32 %v1589_v63, %v1584_v31 }
0x2e13   :  { %v1776_v30 = vpop.permute.xlu0 %1775 }
0x2e14   :  { %v1594_v34 = vpack.c.bf16 %v1593_v33, %v1592_v32 }
0x2e16   :  { %2270 = vmatmul.mubr.msk.bf16.vlgmr.msra.gmra.mrb[36].mxu1 %vm189_vm6, %v1594_v34 }
0x2e17   :  { %2283 = vmatprep.mubr.msk.bf16.mxu1 %vm2414_vm1, %v2413_v2  ;;  %2280 = vmatpush3.bf16.msra.mxu1 %v2313_v28 }
0x2e18   :  { %2281 = vmatprep.subr.bf16.mxu1 %v2413_v2 }
0x2e1b   :  { %2282 = vmatpush3.bf16.msra.mxu1 %v2314_v29 }
0x2ee9   :  { %v1648_v37 = vpop.f32.mrb[36].mxu1 }
0x2eea   :  { %v1656_v40 = vrot.slane %v1648_v37, 2  ;;  %v2271_v41 = vpop.f32.mrb[37].mxu1  ;;  %v1659_v46 = vrot.slane %v1648_v37, 4  ;;  %v1662_v42 = vrot.slane %v1648_v37, 6 }
0x2eeb   :  { %v1651_v43 = vpop.f32.mrb[38].mxu1 }
0x2eec   :  { %v1658_v45 = vmax.f32 %v1648_v37, %v1656_v40  ;;  %v2272_v47 = vpop.f32.mrb[39].mxu1  ;;  %v1667_v50 = vrot.slane %v1651_v43, 2  ;;  %v1670_v53 = vrot.slane %v1651_v43, 4  ;;  %v1673_v55 = vrot.slane %v1651_v43, 6  ;;  %v1778_v40 = vpop.permute.xlu1 %1777 }
0x2eee   :  { %v1661_v48 = vmax.f32 %v1658_v45, %v1659_v46 }
0x2ef0   :  { %v1664_v49 = vmax.f32 %v1661_v48, %v1662_v42 }
0x2ef2   :  { %v1665_v0 = vmax.f32 %v1664_v49, %v1651_v43 }
0x2ef4   :  { %v1669_v52 = vmax.f32 %v1665_v0, %v1667_v50 }
0x2ef6   :  { %v1672_v54 = vmax.f32 %v1669_v52, %v1670_v53 }
0x2ef8   :  { %v1675_v56 = vmax.f32 %v1672_v54, %v1673_v55  ;;  %v2038_v54 = vld [vmem:[%s2998_s10] ss:$0 sm:$0xff] }
0x2efa   :  { %v1677_v57 = vrot.slane %v1675_v56, 6  ;;  %v1679_v22 = vrot.slane %v1675_v56, 4  ;;  %v1681_v58 = vrot.slane %v1675_v56, 2 }
0x2efc   :  { %v1683_v59 = vsel %vm132_vm0, %v1675_v56, %v1677_v57 }
0x2efd   :  { %v1684_v60 = vsel %vm799_vm7, %v1683_v59, %v1679_v22 }
0x2efe   :  { %v1685_v61 = vsel %vm801_vm8, %v1684_v60, %v1681_v58 }
0x2eff   :  { %v1686_v14 = vsub.f32 %v1648_v37, %v1685_v61  ;;  %v1687_v62 = vsub.f32 %v1651_v43, %v1685_v61 }
0x2f01   :  { %v1688_v1 = vmul.f32 1.442695, %v1686_v14  ;;  %v1690_v4 = vmul.f32 1.442695, %v1687_v62 }
0x2f03   :  { %2381 = vpow2.f32 %v1688_v1  ;;  %v2042_v1 = vld [vmem:[%s2999_s11] ss:$0 sm:$0xff] }
0x2f04   :  { %2383 = vpow2.f32 %v1690_v4 }
0x2f0d   :  { %v2382_v5 = vpop.eup %2381 }
0x2f0e   :  { %v1693_v7 = vrot.slane %v2382_v5, 2  ;;  %v1696_v6 = vrot.slane %v2382_v5, 4  ;;  %v1699_v9 = vrot.slane %v2382_v5, 6  ;;  %v2384_v51 = vpop.eup %2383 }
0x2f0f   :  { %v1704_v11 = vrot.slane %v2384_v51, 2  ;;  %v1707_v13 = vrot.slane %v2384_v51, 4  ;;  %v1710_v16 = vrot.slane %v2384_v51, 6 }
0x2f10   :  { %v1695_v38 = vadd.f32 %v2382_v5, %v1693_v7 }
0x2f12   :  { %v1698_v8 = vadd.f32 %v1696_v6, %v1695_v38 }
0x2f14   :  { %v1701_v44 = vadd.f32 %v1699_v9, %v1698_v8  ;;  %v2043_v8 = vld [vmem:[%s3000_s12] ss:$0 sm:$0xff] }
0x2f15   :  { %v2315_v9 = vld [vmem:[%s3001_s13] sm:$0xff]  }
0x2f16   :  { %v1702_v10 = vadd.f32 %v2384_v51, %v1701_v44 }
0x2f18   :  { %v1706_v12 = vadd.f32 %v1704_v11, %v1702_v10 }
0x2f1a   :  { %v1709_v15 = vadd.f32 %v1707_v13, %v1706_v12 }
0x2f1c   :  { %v1712_v17 = vadd.f32 %v1710_v16, %v1709_v15 }
0x2f1e   :  { %2385 = vrcp.f32 %v1712_v17 }
0x2f28   :  { %v2386_v39 = vpop.eup %2385 }
0x2f29   :  { %v1715_v18 = vrot.slane %v2386_v39, 6  ;;  %v1717_v19 = vrot.slane %v2386_v39, 4  ;;  %v1719_v20 = vrot.slane %v2386_v39, 2 }
0x2f2b   :  { %v1721_v21 = vsel %vm132_vm0, %v2386_v39, %v1715_v18 }
0x2f2c   :  { %v1722_v23 = vsel %vm799_vm7, %v1721_v21, %v1717_v19 }
0x2f2d   :  { %v1723_v24 = vsel %vm801_vm8, %v1722_v23, %v1719_v20 }
0x2f2e   :  { %v1724_v25 = vmul.f32 %v2382_v5, %v1723_v24  ;;  %v1725_v26 = vmul.f32 %v2384_v51, %v1723_v24  ;;  %v2316_v51 = vld [vmem:[%s3001_s13 + $0x8] sm:$0xff]  }
0x2f30   :  { %v1726_v27 = vpack.c.bf16 %v1725_v26, %v1724_v25 }
0x2f32   :  { %2276 = vmatmul.mubr.msk.bf16.vlgmr.msra.gmra.mrb[40].mxu0 %vm128_vm2, %v1726_v27 }
0x2f33   :  { %2291 = vmatprep.mubr.msk.bf16.mxu0 %vm2414_vm1, %v2413_v2  ;;  %2288 = vmatpush3.bf16.msra.mxu0 %v2315_v9 }
0x2f34   :  { %2289 = vmatprep.subr.bf16.mxu0 %v2413_v2  ;;  %v2044_v2 = vld [vmem:[%s3002_s14] ss:$0 sm:$0xff] }
0x2f37   :  { %2290 = vmatpush3.bf16.msra.mxu0 %v2316_v51 }
0x3005   :  { %v1768_v31 = vpop.f32.mrb[40].mxu0 }
0x3006   :  { %v1781_v63 = vmul.f32 %v1776_v30, %v1768_v31  ;;  %v2277_v32 = vpop.f32.mrb[41].mxu0 }
0x3007   :  { %v1771_v33 = vpop.f32.mrb[42].mxu0 }
0x3008   :  { %v1784_v34 = vrot.slane %v1781_v63, 2  ;;  %v2278_v35 = vpop.f32.mrb[43].mxu0  ;;  %v1787_v37 = vrot.slane %v1781_v63, 4  ;;  %v1790_v43 = vrot.slane %v1781_v63, 6  ;;  %v1782_v45 = vmul.f32 %v1778_v40, %v1771_v33 }
0x300a   :  { %v1786_v36 = vadd.f32 %v1784_v34, %v1781_v63  ;;  %v1795_v48 = vrot.slane %v1782_v45, 2  ;;  %v1798_v49 = vrot.slane %v1782_v45, 4  ;;  %v1801_v50 = vrot.slane %v1782_v45, 6 }
0x300c   :  { %v1789_v41 = vadd.f32 %v1787_v37, %v1786_v36 }
0x300e   :  { %v1792_v46 = vadd.f32 %v1790_v43, %v1789_v41 }
0x3010   :  { %v1793_v47 = vadd.f32 %v1792_v46, %v1782_v45 }
0x3012   :  { %v1797_v42 = vadd.f32 %v1795_v48, %v1793_v47 }
0x3014   :  { %v1800_v0 = vadd.f32 %v1798_v49, %v1797_v42 }
0x3016   :  { %v1803_v52 = vadd.f32 %v1801_v50, %v1800_v0 }
0x3018   :  { %v1804_v53 = vpack.c.bf16 %v1803_v52, %v1803_v52 }
0x301a   :  { %2284 = vmatmul.mubr.msk.bf16.vlgmr.msra.gmra.mrb[40].mxu1 %vm189_vm6, %v1804_v53 }
0x30ed   :  { %v1865_v55 = vpop.f32.mrb[40].mxu1 }
0x30ee   :  { %v1866_v56 = vadd.f32 %v2038_v54, %v1865_v55  ;;  %v2285_v57 = vpop.f32.mrb[41].mxu1 }
0x30ef   :  { %v1868_v22 = vpop.f32.mrb[42].mxu1 }
0x30f0   :  { %v1872_v58 = vrot.slane %v1866_v56, 2  ;;  %v2286_v59 = vpop.f32.mrb[43].mxu1 }
0x30f2   :  { %1873 = vrot.lane.b32.xlu0 %v1872_v58, %s2419_s20 }
0x3164   :  { %v1874_v60 = vpop.permute.xlu0 %1873 }
0x3165   :  { %v1876_v61 = vadd.f32 %v1874_v60, %v2898_v3 }
0x3167   :  { %1878 = vrot.lane.b32.xlu1 %v1876_v61, %s2418_s2 }
0x31d9   :  { %v1879_v14 = vpop.permute.xlu1 %1878 }
0x31da   :  { %v1882_v62 = vsel %vm1881_vm9, %v1879_v14, 0.0 }
0x31db   :  { %1883 = vadd.xlane.f32.xlu0 %v1882_v62 }
0x31f1   :  { %1906 = vrot.lane.b32.xlu0 %v2042_v1, %s2419_s20 }
0x3268   :  { %v1884_v4 = vpop.xlane.xlu0 %1883 }
0x3269   :  { %v1886_v5 = vmul.f32 0.03125, %v1884_v4 }
0x326b   :  { %v1887_v7 = vsub.f32 %v1876_v61, %v1886_v5 }
0x326c   :  { %v1907_v13 = vpop.permute.xlu0 %1906 }
0x326d   :  { %v1888_v38 = vmul.f32 %v1887_v7, %v1887_v7 }
0x326f   :  { %1890 = vrot.lane.b32.xlu1 %v1888_v38, %s2418_s2 }
0x32e1   :  { %v1891_v6 = vpop.permute.xlu1 %1890 }
0x32e2   :  { %v1893_v3 = vsel %vm1881_vm9, %v1891_v6, 0.0 }
0x32e3   :  { %1894 = vadd.xlane.f32.xlu1 %v1893_v3 }
0x32f4   :  { %1916 = vrot.lane.b32.xlu1 %v2043_v8, %s2419_s20 }
0x3370   :  { %v1895_v44 = vpop.xlane.xlu1 %1894 }
0x3371   :  { %v1896_v10 = vmul.f32 0.03125, %v1895_v44 }
0x3373   :  { %v1897_v11 = vadd.f32 1e-05, %v1896_v10 }
0x3374   :  { %v1917_v16 = vpop.permute.xlu1 %1916 }
0x3375   :  { %2387 = vrsqrt.f32 %v1897_v11 }
0x337f   :  { %v2388_v12 = vpop.eup %2387 }
0x3380   :  { %v1899_v15 = vmul.f32 %v2388_v12, %v1887_v7 }
0x3382   :  { %v1909_v17 = vmul.f32 %v1907_v13, %v1899_v15 }
0x3384   :  { %v1919_v39 = vadd.f32 %v1917_v16, %v1909_v17 }
0x3386   :  { %v1920_v18 = vpack.c.bf16 %v1919_v39, %v1919_v39 }
0x3388   :  { %v1933_v19 = vrot.slane %v1920_v18, 3 }
0x338a   :  { %1934 = vrot.lane.b32.xlu0 %v1933_v19, %s2418_s2 }
0x33fc   :  { %v1935_v20 = vpop.permute.xlu0 %1934 }
0x33fd   :  { %2292 = vmatmul.mubr.msk.bf16.vlgmr.msra.gmra.mrb[44].mxu0 %vm189_vm6, %v1935_v20 }
0x34d0   :  { %v1985_v21 = vpop.f32.mrb[44].mxu0 }
0x34d1   :  { %v1986_v23 = vadd.f32 %v2044_v2, %v1985_v21  ;;  %v2293_v24 = vpop.f32.mrb[45].mxu0 }
0x34d2   :  { %v1988_v25 = vpop.f32.mrb[46].mxu0 }
0x34d3   :  { %1991 = vst [vmem:[#allocation2] sm:$0x3] %v1986_v23  ;;  %v2294_v26 = vpop.f32.mrb[47].mxu0 }
0x34d4   :  { %2400 = shalt.err (!%p2397_p4)
}
0x34d5   :  { %s2401_s14 = scalar_lea.hbm %s3005_s17, 32 }
0x34d6   :  { %p2402_p5 = scmp.ne.s32.totalorder %s3005_s17, %s2401_s14  ;;  %p2405_p6 = scmp.lt.u32.totalorder %s2401_s14, %s3005_s17 }
0x34d8   :  { %p2407_p7 = pnand %p2405_p6, %p2402_p5 }
0x34da   :  { %2410 = shalt.err (!%p2407_p7)
}
0x34db   :  { %2001 = dma.vmem_to_hbm [thread:$0]  %s1999_s28, 32, %s3005_s17, [#allocation3]  }
0x34dc   :  { %2411 = dma.done.wait [#allocation3], 32  }
0x34dd   :  { %2412 = vsyncadd [#allocation3], 4294967264 }
0x34de   :  { %2005 = vsyncpa [#allocation3], 1 }

</bundles_post_ra>
